<compile_context>
chip_gen: v5e
topology: v5e:2x2
jax: 0.10.0
libtpu: 0.0.40
codegen_flags: <defaults>
</compile_context>

<pallas_src>
import jax
import jax.numpy as jnp
from jax.experimental import pallas as pl
from jax.experimental.pallas import tpu as pltpu

FEAT = 2048    # backbone feature width (fc expects 2048 inputs)
NUM_OUT = 8    # nn.Linear(2048, 8)
C_PAD = 128    # padded input-channel width (lane-aligned)
MAX_TILE_M = 128  # max batch rows per grid block


def _ensemble_kernel(xp_ref, w12_ref, b12_ref, wfc_ref, bfc_ref, o_ref):
    """f12 = relu(x @ [W1||W2] + [b1||b2]); out = (f12[:, :F] + f12[:, F:]) @ Wfc + bfc."""
    xp = xp_ref[...]                                               # [TM, C_PAD] bf16

    # Single fused N=4096 MXU matmul for both backbone stand-ins (f32 accumulation).
    f12 = jnp.dot(xp, w12_ref[...], preferred_element_type=jnp.float32)
    f12 = jnp.maximum(f12 + b12_ref[...], 0.0)                     # [TM, 2*FEAT] f32

    # x = x1 + x2  (lane-aligned split at 2048)
    fsum = f12[:, :FEAT] + f12[:, FEAT:]                           # [TM, FEAT] f32

    # x = self.fc(x)
    out = jnp.dot(fsum.astype(jnp.bfloat16), wfc_ref[...],
                  preferred_element_type=jnp.float32) + bfc_ref[...]
    o_ref[...] = out                                               # [TM, NUM_OUT] f32


def init_params(key, in_channels):
    k1, k2, k3, k4, k5, k6 = jax.random.split(key, 6)
    scale_b = 1.0 / jnp.sqrt(in_channels)
    scale_f = 1.0 / jnp.sqrt(FEAT)
    return {
        "w1": jax.random.normal(k1, (in_channels, FEAT), jnp.float32) * scale_b,
        "b1": jax.random.normal(k2, (FEAT,), jnp.float32) * scale_b,
        "w2": jax.random.normal(k3, (in_channels, FEAT), jnp.float32) * scale_b,
        "b2": jax.random.normal(k4, (FEAT,), jnp.float32) * scale_b,
        "wfc": jax.random.normal(k5, (FEAT, NUM_OUT), jnp.float32) * scale_f,
        "bfc": jax.random.normal(k6, (NUM_OUT,), jnp.float32) * scale_f,
    }


def prepare_params(params, in_channels):
    """One-time param prep: pad, concatenate W1||W2, cast matmul weights to bf16."""
    C = in_channels
    assert C <= C_PAD
    w12 = jnp.zeros((C_PAD, 2 * FEAT), jnp.float32)
    w12 = w12.at[:C, :FEAT].set(params["w1"]).at[:C, FEAT:].set(params["w2"])
    b12 = jnp.concatenate([params["b1"], params["b2"]]).reshape(1, 2 * FEAT)
    return {
        "w12": w12.astype(jnp.bfloat16),                 # [C_PAD, 2*FEAT] bf16
        "b12": b12.astype(jnp.float32),                  # [1, 2*FEAT]     f32
        "wfc": params["wfc"].astype(jnp.bfloat16),       # [FEAT, NUM_OUT] bf16
        "bfc": params["bfc"].reshape(1, NUM_OUT).astype(jnp.float32),
    }


def ensemble_forward(x, prep):
    B, C, H, W = x.shape
    assert C <= C_PAD

    # Glue: global average pool over spatial dims (NCHW -> [B, C]); pad to
    # aligned kernel shapes.  Zero padding keeps the matmul results exact.
    pooled = jnp.mean(x.astype(jnp.float32), axis=(2, 3))          # [B, C]

    m_pad = ((B + 7) // 8) * 8
    tile_m = min(m_pad, MAX_TILE_M)
    m_pad = ((m_pad + tile_m - 1) // tile_m) * tile_m
    grid = (m_pad // tile_m,)

    xp = (jnp.zeros((m_pad, C_PAD), jnp.float32)
          .at[:B, :C].set(pooled)
          .astype(jnp.bfloat16))                                   # [m_pad, C_PAD] bf16

    flops = 2 * m_pad * C_PAD * (2 * FEAT) + 2 * m_pad * FEAT * NUM_OUT
    bytes_accessed = (
        xp.size * 2
        + prep["w12"].size * 2 + prep["b12"].size * 4
        + prep["wfc"].size * 2 + prep["bfc"].size * 4
        + m_pad * NUM_OUT * 4
    )

    out = pl.pallas_call(
        _ensemble_kernel,
        out_shape=jax.ShapeDtypeStruct((m_pad, NUM_OUT), jnp.float32),
        grid=grid,
        in_specs=[
            pl.BlockSpec((tile_m, C_PAD), lambda i: (i, 0)),        # xp
            pl.BlockSpec((C_PAD, 2 * FEAT), lambda i: (0, 0)),      # w12 (resident)
            pl.BlockSpec((1, 2 * FEAT), lambda i: (0, 0)),          # b12
            pl.BlockSpec((FEAT, NUM_OUT), lambda i: (0, 0)),        # wfc
            pl.BlockSpec((1, NUM_OUT), lambda i: (0, 0)),           # bfc
        ],
        out_specs=pl.BlockSpec((tile_m, NUM_OUT), lambda i: (i, 0)),
        compiler_params=pltpu.CompilerParams(
            dimension_semantics=("parallel",)),
        cost_estimate=pl.CostEstimate(
            flops=int(flops), transcendentals=0, bytes_accessed=int(bytes_accessed)),
    )(xp, prep["w12"], prep["b12"], prep["wfc"], prep["bfc"])

    return out[:B]                                                  # [B, 8]


def reference_forward_f32(x, params):
    """Pure-f32 reference of the same synthetic forward (original semantics)."""
    pooled = jnp.mean(x.astype(jnp.float32), axis=(2, 3))
    f1 = jnp.maximum(pooled @ params["w1"] + params["b1"], 0.0)
    f2 = jnp.maximum(pooled @ params["w2"] + params["b2"], 0.0)
    return (f1 + f2) @ params["wfc"] + params["bfc"]


def reference_forward_bf16(x, params):
    """Reference that mimics the kernel's bf16-weight / f32-accumulate math."""
    pooled = jnp.mean(x.astype(jnp.float32), axis=(2, 3)).astype(jnp.bfloat16)
    w1 = params["w1"].astype(jnp.bfloat16)
    w2 = params["w2"].astype(jnp.bfloat16)
    wfc = params["wfc"].astype(jnp.bfloat16)
    f1 = jnp.maximum(
        jnp.dot(pooled, w1, preferred_element_type=jnp.float32) + params["b1"], 0.0)
    f2 = jnp.maximum(
        jnp.dot(pooled, w2, preferred_element_type=jnp.float32) + params["b2"], 0.0)
    fsum = (f1 + f2).astype(jnp.bfloat16)
    return jnp.dot(fsum, wfc, preferred_element_type=jnp.float32) + params["bfc"]


if __name__ == "__main__":
    key = jax.random.PRNGKey(0)
    kx, kp = jax.random.split(key)

    # Small NCHW input consistent with the module's conv-style forward.
    x = jax.random.normal(kx, (2, 4, 16, 16), jnp.float32)
    params = init_params(kp, in_channels=4)
    prep = prepare_params(params, in_channels=4)        # one-time weight prep

    out = ensemble_forward(x, prep)
    out = jax.block_until_ready(out)
    assert out.shape == (2, NUM_OUT)

    # Tight check against a reference using the same bf16 weight quantization.
    ref_bf16 = reference_forward_bf16(x, params)
    assert jnp.allclose(out, ref_bf16, atol=1e-3, rtol=1e-3), (out, ref_bf16)

    # Looser check against the pure-f32 original semantics (expected bf16 error).
    ref_f32 = reference_forward_f32(x, params)
    assert jnp.allclose(out, ref_f32, atol=5e-2, rtol=5e-2), (out, ref_f32)

    print("KERNEL_OK")
</pallas_src>

<mosaic_0001>
module attributes {stable_mosaic.version = 11 : i64} {
  func.func @_ensemble_kernel(%arg0: i32, %arg1: memref<8x128xbf16, #tpu.memory_space<vmem>>, %arg2: memref<128x4096xbf16, #tpu.memory_space<vmem>>, %arg3: memref<1x4096xf32, #tpu.memory_space<vmem>>, %arg4: memref<2048x8xbf16, #tpu.memory_space<vmem>>, %arg5: memref<1x8xf32, #tpu.memory_space<vmem>>, %arg6: memref<8x8xf32, #tpu.memory_space<vmem>>) attributes {dimension_semantics = [#tpu.dimension_semantics<parallel>], iteration_bounds = array<i64: 1>, scalar_prefetch = 0 : i64, scratch_operands = 0 : i64, tpu.core_type = #tpu.core_type<tc>, window_params = [{transform_indices = @transform_0, window_bounds = array<i64: 8, 128>}, {pipeline_mode = #tpu.pipeline_mode<synchronous>, transform_indices = @transform_1, window_bounds = array<i64: 128, 4096>}, {pipeline_mode = #tpu.pipeline_mode<synchronous>, transform_indices = @transform_2, window_bounds = array<i64: 1, 4096>}, {pipeline_mode = #tpu.pipeline_mode<synchronous>, transform_indices = @transform_3, window_bounds = array<i64: 2048, 8>}, {pipeline_mode = #tpu.pipeline_mode<synchronous>, transform_indices = @transform_4, window_bounds = array<i64: 1, 8>}, {transform_indices = @transform_5, window_bounds = array<i64: 8, 8>}]} {
    %c0 = arith.constant 0 : index
    %c0_0 = arith.constant 0 : index
    %0 = vector.load %arg1[%c0, %c0_0] : memref<8x128xbf16, #tpu.memory_space<vmem>>, vector<8x128xbf16>
    %c0_1 = arith.constant 0 : index
    %c0_2 = arith.constant 0 : index
    %1 = vector.load %arg2[%c0_1, %c0_2] : memref<128x4096xbf16, #tpu.memory_space<vmem>>, vector<128x4096xbf16>
    %cst = arith.constant dense<0.000000e+00> : vector<8x4096xf32>
    %2 = tpu.matmul %0, %1, %cst {dimension_numbers = #tpu.dot_dimension_numbers<[1], [0], [0], [1], [0, 0, 1, 1], [], []>} : vector<8x128xbf16>, vector<128x4096xbf16>, vector<8x4096xf32> -> vector<8x4096xf32>
    %c0_3 = arith.constant 0 : index
    %c0_4 = arith.constant 0 : index
    %3 = vector.load %arg3[%c0_3, %c0_4] : memref<1x4096xf32, #tpu.memory_space<vmem>>, vector<1x4096xf32>
    %4 = vector.broadcast %3 : vector<1x4096xf32> to vector<8x4096xf32>
    %5 = arith.addf %2, %4 : vector<8x4096xf32>
    %cst_5 = arith.constant 0.000000e+00 : f32
    %6 = vector.broadcast %cst_5 : f32 to vector<8x4096xf32>
    %7 = arith.maximumf %5, %6 : vector<8x4096xf32>
    %8 = vector.extract_strided_slice %7 {offsets = [0, 0], sizes = [8, 2048], strides = [1, 1]} : vector<8x4096xf32> to vector<8x2048xf32>
    %9 = vector.extract_strided_slice %7 {offsets = [0, 2048], sizes = [8, 2048], strides = [1, 1]} : vector<8x4096xf32> to vector<8x2048xf32>
    %10 = arith.addf %8, %9 : vector<8x2048xf32>
    %11 = arith.truncf %10 : vector<8x2048xf32> to vector<8x2048xbf16>
    %c0_6 = arith.constant 0 : index
    %c0_7 = arith.constant 0 : index
    %12 = vector.load %arg4[%c0_6, %c0_7] : memref<2048x8xbf16, #tpu.memory_space<vmem>>, vector<2048x8xbf16>
    %cst_8 = arith.constant dense<0.000000e+00> : vector<8x8xf32>
    %13 = tpu.matmul %11, %12, %cst_8 {dimension_numbers = #tpu.dot_dimension_numbers<[1], [0], [0], [1], [0, 0, 1, 1], [], []>} : vector<8x2048xbf16>, vector<2048x8xbf16>, vector<8x8xf32> -> vector<8x8xf32>
    %c0_9 = arith.constant 0 : index
    %c0_10 = arith.constant 0 : index
    %14 = vector.load %arg5[%c0_9, %c0_10] : memref<1x8xf32, #tpu.memory_space<vmem>>, vector<1x8xf32>
    %15 = vector.broadcast %14 : vector<1x8xf32> to vector<8x8xf32>
    %16 = arith.addf %13, %15 : vector<8x8xf32>
    %c0_11 = arith.constant 0 : index
    %c0_12 = arith.constant 0 : index
    %17 = vector.load %arg6[%c0_11, %c0_12] : memref<8x8xf32, #tpu.memory_space<vmem>>, vector<8x8xf32>
    tpu.vector_store %arg6[%c0_11, %c0_12], %16 {strides = array<i32>} : memref<8x8xf32, #tpu.memory_space<vmem>>, vector<8x8xf32>,
    return
  }
  func.func @transform_0(%arg0: i32) -> (i32, i32) {
    %c0_i32 = arith.constant 0 : i32
    %c0_i32_0 = arith.constant 0 : i32
    return %arg0, %c0_i32 : i32, i32
  }
  func.func @transform_1(%arg0: i32) -> (i32, i32) {
    %c0_i32 = arith.constant 0 : i32
    %c0_i32_0 = arith.constant 0 : i32
    %c0_i32_1 = arith.constant 0 : i32
    return %c0_i32, %c0_i32_0 : i32, i32
  }
  func.func @transform_2(%arg0: i32) -> (i32, i32) {
    %c0_i32 = arith.constant 0 : i32
    %c0_i32_0 = arith.constant 0 : i32
    %c0_i32_1 = arith.constant 0 : i32
    return %c0_i32, %c0_i32_0 : i32, i32
  }
  func.func @transform_3(%arg0: i32) -> (i32, i32) {
    %c0_i32 = arith.constant 0 : i32
    %c0_i32_0 = arith.constant 0 : i32
    %c0_i32_1 = arith.constant 0 : i32
    return %c0_i32, %c0_i32_0 : i32, i32
  }
  func.func @transform_4(%arg0: i32) -> (i32, i32) {
    %c0_i32 = arith.constant 0 : i32
    %c0_i32_0 = arith.constant 0 : i32
    %c0_i32_1 = arith.constant 0 : i32
    return %c0_i32, %c0_i32_0 : i32, i32
  }
  func.func @transform_5(%arg0: i32) -> (i32, i32) {
    %c0_i32 = arith.constant 0 : i32
    %c0_i32_0 = arith.constant 0 : i32
    return %arg0, %c0_i32 : i32, i32
  }
}

</mosaic_0001>

<bundles_post_ra>
// kernel: tpu_custom_call.1
= control target key start
LH: loop header
LB: loop body
LE: loop exit
PB: predicated region body
PF: predicated region fallthrough
CT: control target
= control target key end

     0   :  { %10 = vsyncpa [#allocation3], 0  ;;  %s5928_s0 = inlined_call_operand.vmem [shape: bf16[8,128], index: 0, kind: input, shape index: {}]   ;;  %s5929_s1 = inlined_call_operand.hbm [shape: bf16[128,4096], index: 1, kind: input, shape index: {}]   ;;  %s5930_s2 = inlined_call_operand.vmem [shape: f32[1,4096], index: 2, kind: input, shape index: {}]   ;;  %s5931_s3 = inlined_call_operand.vmem [shape: bf16[2048,8], index: 3, kind: input, shape index: {}]   ;;  %s5932_s4 = inlined_call_operand.vmem [shape: f32[1,8], index: 4, kind: input, shape index: {}]   ;;  %s5933_s5 = inlined_call_operand.hbm [shape: f32[8,8], index: 5, kind: output, shape index: {}]  }
   0x1   :  { %11 = vsyncpa [#allocation4], 0  ;;  %s18_s20 = sshll.u32 %s5929_s1, 4  ;;  %s5359_s21 = smov [#allocation2]   ;;  %s19_s20 = int_to_ptr.hbm [resolvable:$true] %s18_s20 }
   0x2   :  { %s20_s22 = sshll.u32 %s5359_s21, 4  ;;  %s5360_s23 = smov 2048   ;;  %s21_s22 = int_to_ptr.vmem [resolvable:$true] %s20_s22 }
   0x3   :  { %s5361_s24 = smov 128  }
   0x4   :  { %26 = dma.hbm_to_vmem [thread:$0]  %s19_s20, 32768, %s21_s22, [#allocation3], %s5360_s23, %s5360_s23, %s5361_s24  }
   0x5   :  { %5355 = dma.done.wait [#allocation3], 32768  }
   0x6   :  { %5356 = vsyncadd [#allocation3], 4294934528  ;;  %v4279_v0 = vld [vmem:[#allocation2 + $0x700] sm:$0xf]  ;;  %v5141_v2 = vld [vmem:[#allocation2 + $0x704] sm:$0xf] }
   0x7   :  { %v5157_v1 = vld [vmem:[#allocation2 + $0x77c] sm:$0xf0]  ;;  %v4281_v4 = vld [vmem:[#allocation2 + $0x780] sm:$0xf0]  ;;  %v4287_v5 = vld [vmem:[#allocation2 + $0x708] sm:$0xf] }
   0x8   :  { %v4280_v3 = vor.u32 %v5157_v1, %v4279_v0  ;;  %v5158_v6 = vld [vmem:[#allocation2 + $0x784] sm:$0xf0]  ;;  %v4284_v7 = vor.u32 %v5141_v2, %v4281_v4  ;;  %v5142_v9 = vld [vmem:[#allocation2 + $0x70c] sm:$0xf]  ;;  %v4151_v11 = vld [vmem:[#allocation2 + $0x600] sm:$0xf] }
   0x9   :  { %v4288_v8 = vor.u32 %v5158_v6, %v4287_v5  ;;  %v4289_v10 = vld [vmem:[#allocation2 + $0x788] sm:$0xf0]  ;;  %v5125_v13 = vld [vmem:[#allocation2 + $0x67c] sm:$0xf0]  ;;  %v5109_v14 = vld [vmem:[#allocation2 + $0x604] sm:$0xf] }
   0xa   :  { %1646 = vmatpush.bf16.msra.mxu0 %v4280_v3  ;;  %v4292_v12 = vor.u32 %v5142_v9, %v4289_v10  ;;  %v4153_v15 = vld [vmem:[#allocation2 + $0x680] sm:$0xf0]  ;;  %1659 = vmatpush.bf16.msra.mxu1 %v4284_v7  ;;  %v4152_v16 = vor.u32 %v5125_v13, %v4151_v11  ;;  %v4159_v18 = vld [vmem:[#allocation2 + $0x608] sm:$0xf]  ;;  %v5110_v20 = vld [vmem:[#allocation2 + $0x60c] sm:$0xf] }
   0xb   :  { %1672 = vmatpush.bf16.msra.mxu2 %v4288_v8  ;;  %v4156_v17 = vor.u32 %v5109_v14, %v4153_v15  ;;  %v5126_v19 = vld [vmem:[#allocation2 + $0x684] sm:$0xf0]  ;;  %v4161_v22 = vld [vmem:[#allocation2 + $0x688] sm:$0xf0]  ;;  %v4023_v23 = vld [vmem:[#allocation2 + $0x500] sm:$0xf] }
   0xc   :  { %1685 = vmatpush.bf16.msra.mxu3 %v4292_v12  ;;  %v4160_v21 = vor.u32 %v5126_v19, %v4159_v18  ;;  %v5093_v24 = vld [vmem:[#allocation2 + $0x57c] sm:$0xf0]  ;;  %v4164_v25 = vor.u32 %v5110_v20, %v4161_v22  ;;  %v5077_v26 = vld [vmem:[#allocation2 + $0x504] sm:$0xf]  ;;  %v4031_v28 = vld [vmem:[#allocation2 + $0x508] sm:$0xf] }
   0xd   :  { %v4025_v27 = vld [vmem:[#allocation2 + $0x580] sm:$0xf0]  ;;  %v4024_v29 = vor.u32 %v5093_v24, %v4023_v23  ;;  %v5094_v30 = vld [vmem:[#allocation2 + $0x584] sm:$0xf0]  ;;  %v5078_v31 = vld [vmem:[#allocation2 + $0x50c] sm:$0xf] }
   0xe   :  { %1647 = vmatpush.bf16.msra.mxu0 %v4152_v16  ;;  %v4033_v32 = vld [vmem:[#allocation2 + $0x588] sm:$0xf0]  ;;  %1660 = vmatpush.bf16.msra.mxu1 %v4156_v17  ;;  %v4028_v33 = vor.u32 %v5077_v26, %v4025_v27  ;;  %v4032_v34 = vor.u32 %v5094_v30, %v4031_v28  ;;  %v3895_v35 = vld [vmem:[#allocation2 + $0x400] sm:$0xf]  ;;  %v5045_v37 = vld [vmem:[#allocation2 + $0x404] sm:$0xf] }
   0xf   :  { %1673 = vmatpush.bf16.msra.mxu2 %v4160_v21  ;;  %v5061_v36 = vld [vmem:[#allocation2 + $0x47c] sm:$0xf0]  ;;  %v4036_v38 = vor.u32 %v5078_v31, %v4033_v32  ;;  %v3897_v39 = vld [vmem:[#allocation2 + $0x480] sm:$0xf0]  ;;  %v3903_v40 = vld [vmem:[#allocation2 + $0x408] sm:$0xf] }
  0x10   :  { %1686 = vmatpush.bf16.msra.mxu3 %v4164_v25  ;;  %v5062_v41 = vld [vmem:[#allocation2 + $0x484] sm:$0xf0]  ;;  %v5046_v42 = vld [vmem:[#allocation2 + $0x40c] sm:$0xf]  ;;  %v3896_v44 = vor.u32 %v5061_v36, %v3895_v35  ;;  %v3900_v45 = vor.u32 %v5045_v37, %v3897_v39  ;;  %v3767_v47 = vld [vmem:[#allocation2 + $0x300] sm:$0xf] }
  0x11   :  { %v3905_v43 = vld [vmem:[#allocation2 + $0x488] sm:$0xf0]  ;;  %v3904_v46 = vor.u32 %v5062_v41, %v3903_v40  ;;  %v5029_v48 = vld [vmem:[#allocation2 + $0x37c] sm:$0xf0]  ;;  %v5013_v49 = vld [vmem:[#allocation2 + $0x304] sm:$0xf] }
  0x12   :  { %1648 = vmatpush.bf16.msra.mxu0 %v4024_v29  ;;  %1661 = vmatpush.bf16.msra.mxu1 %v4028_v33  ;;  %v3908_v50 = vor.u32 %v5046_v42, %v3905_v43  ;;  %v3769_v51 = vld [vmem:[#allocation2 + $0x380] sm:$0xf0]  ;;  %v3775_v52 = vld [vmem:[#allocation2 + $0x308] sm:$0xf]  ;;  %v5014_v54 = vld [vmem:[#allocation2 + $0x30c] sm:$0xf]  ;;  %v3768_v56 = vor.u32 %v5029_v48, %v3767_v47 }
  0x13   :  { %1674 = vmatpush.bf16.msra.mxu2 %v4032_v34  ;;  %v5030_v53 = vld [vmem:[#allocation2 + $0x384] sm:$0xf0]  ;;  %v3777_v55 = vld [vmem:[#allocation2 + $0x388] sm:$0xf0]  ;;  %v3772_v57 = vor.u32 %v5013_v49, %v3769_v51  ;;  %v3639_v59 = vld [vmem:[#allocation2 + $0x200] sm:$0xf] }
  0x14   :  { %1687 = vmatpush.bf16.msra.mxu3 %v4036_v38  ;;  %v3776_v58 = vor.u32 %v5030_v53, %v3775_v52  ;;  %v4997_v60 = vld [vmem:[#allocation2 + $0x27c] sm:$0xf0]  ;;  %v4981_v61 = vld [vmem:[#allocation2 + $0x204] sm:$0xf]  ;;  %v3780_v62 = vor.u32 %v5014_v54, %v3777_v55  ;;  %v3647_v0 = vld [vmem:[#allocation2 + $0x208] sm:$0xf] }
  0x15   :  { %v3641_v63 = vld [vmem:[#allocation2 + $0x280] sm:$0xf0]  ;;  %v4998_v1 = vld [vmem:[#allocation2 + $0x284] sm:$0xf0]  ;;  %v4982_v2 = vld [vmem:[#allocation2 + $0x20c] sm:$0xf]  ;;  %v3640_v4 = vor.u32 %v4997_v60, %v3639_v59 }
  0x16   :  { %1649 = vmatpush.bf16.msra.mxu0 %v3896_v44  ;;  %1662 = vmatpush.bf16.msra.mxu1 %v3900_v45  ;;  %v3649_v3 = vld [vmem:[#allocation2 + $0x288] sm:$0xf0]  ;;  %v3644_v5 = vor.u32 %v4981_v61, %v3641_v63  ;;  %v3648_v6 = vor.u32 %v4998_v1, %v3647_v0  ;;  %v3511_v7 = vld [vmem:[#allocation2 + $0x100] sm:$0xf]  ;;  %v4949_v9 = vld [vmem:[#allocation2 + $0x104] sm:$0xf] }
  0x17   :  { %1675 = vmatpush.bf16.msra.mxu2 %v3904_v46  ;;  %v4965_v8 = vld [vmem:[#allocation2 + $0x17c] sm:$0xf0]  ;;  %v3652_v10 = vor.u32 %v4982_v2, %v3649_v3  ;;  %v3513_v11 = vld [vmem:[#allocation2 + $0x180] sm:$0xf0]  ;;  %v3519_v12 = vld [vmem:[#allocation2 + $0x108] sm:$0xf] }
  0x18   :  { %1688 = vmatpush.bf16.msra.mxu3 %v3908_v50  ;;  %v4966_v13 = vld [vmem:[#allocation2 + $0x184] sm:$0xf0]  ;;  %v4950_v14 = vld [vmem:[#allocation2 + $0x10c] sm:$0xf]  ;;  %v3512_v16 = vor.u32 %v4965_v8, %v3511_v7  ;;  %v3383_v17 = vld [vmem:[#allocation2] sm:$0xf]  ;;  %v3516_v19 = vor.u32 %v4949_v9, %v3513_v11 }
  0x19   :  { %v3521_v15 = vld [vmem:[#allocation2 + $0x188] sm:$0xf0]  ;;  %v4933_v18 = vld [vmem:[#allocation2 + $0x7c] sm:$0xf0]  ;;  %v3520_v20 = vor.u32 %v4966_v13, %v3519_v12  ;;  %v4917_v21 = vld [vmem:[#allocation2 + $0x4] sm:$0xf] }
  0x1a   :  { %1650 = vmatpush.bf16.msra.mxu0 %v3768_v56  ;;  %1663 = vmatpush.bf16.msra.mxu1 %v3772_v57  ;;  %v3385_v22 = vld [vmem:[#allocation2 + $0x80] sm:$0xf0]  ;;  %v3391_v23 = vld [vmem:[#allocation2 + $0x8] sm:$0xf]  ;;  %v3524_v24 = vor.u32 %v4950_v14, %v3521_v15  ;;  %v4918_v26 = vld [vmem:[#allocation2 + $0xc] sm:$0xf]  ;;  %v3384_v31 = vor.u32 %v4933_v18, %v3383_v17 }
  0x1b   :  { %1676 = vmatpush.bf16.msra.mxu2 %v3776_v58  ;;  %v4934_v25 = vld [vmem:[#allocation2 + $0x84] sm:$0xf0]  ;;  %v3393_v27 = vld [vmem:[#allocation2 + $0x88] sm:$0xf0]  ;;  %v4295_v28 = vld [vmem:[#allocation2 + $0x710] sm:$0xf]  ;;  %v3388_v35 = vor.u32 %v4917_v21, %v3385_v22 }
  0x1c   :  { %1689 = vmatpush.bf16.msra.mxu3 %v3780_v62  ;;  %v5159_v29 = vld [vmem:[#allocation2 + $0x78c] sm:$0xf0]  ;;  %v5143_v30 = vld [vmem:[#allocation2 + $0x714] sm:$0xf]  ;;  %v4303_v33 = vld [vmem:[#allocation2 + $0x718] sm:$0xf]  ;;  %v3392_v36 = vor.u32 %v4934_v25, %v3391_v23  ;;  %v3396_v39 = vor.u32 %v4918_v26, %v3393_v27 }
  0x1d   :  { %v4297_v32 = vld [vmem:[#allocation2 + $0x790] sm:$0xf0]  ;;  %v5160_v34 = vld [vmem:[#allocation2 + $0x794] sm:$0xf0]  ;;  %v5144_v37 = vld [vmem:[#allocation2 + $0x71c] sm:$0xf]  ;;  %v4296_v40 = vor.u32 %v5159_v29, %v4295_v28 }
  0x1e   :  { %1651 = vmatpush.bf16.msra.mxu0 %v3640_v4  ;;  %1664 = vmatpush.bf16.msra.mxu1 %v3644_v5  ;;  %v4305_v38 = vld [vmem:[#allocation2 + $0x798] sm:$0xf0]  ;;  %v4300_v41 = vor.u32 %v5143_v30, %v4297_v32  ;;  %v4304_v42 = vor.u32 %v5160_v34, %v4303_v33  ;;  %v4167_v43 = vld [vmem:[#allocation2 + $0x610] sm:$0xf]  ;;  %v5111_v45 = vld [vmem:[#allocation2 + $0x614] sm:$0xf] }
  0x1f   :  { %1677 = vmatpush.bf16.msra.mxu2 %v3648_v6  ;;  %v5127_v44 = vld [vmem:[#allocation2 + $0x68c] sm:$0xf0]  ;;  %v4308_v46 = vor.u32 %v5144_v37, %v4305_v38  ;;  %v4169_v47 = vld [vmem:[#allocation2 + $0x690] sm:$0xf0]  ;;  %v4175_v48 = vld [vmem:[#allocation2 + $0x618] sm:$0xf] }
  0x20   :  { %1690 = vmatpush.bf16.msra.mxu3 %v3652_v10  ;;  %v5128_v49 = vld [vmem:[#allocation2 + $0x694] sm:$0xf0]  ;;  %v5112_v50 = vld [vmem:[#allocation2 + $0x61c] sm:$0xf]  ;;  %v4168_v52 = vor.u32 %v5127_v44, %v4167_v43  ;;  %v4172_v53 = vor.u32 %v5111_v45, %v4169_v47  ;;  %v4039_v55 = vld [vmem:[#allocation2 + $0x510] sm:$0xf] }
  0x21   :  { %v4177_v51 = vld [vmem:[#allocation2 + $0x698] sm:$0xf0]  ;;  %v4176_v54 = vor.u32 %v5128_v49, %v4175_v48  ;;  %v5095_v56 = vld [vmem:[#allocation2 + $0x58c] sm:$0xf0]  ;;  %v5079_v57 = vld [vmem:[#allocation2 + $0x514] sm:$0xf] }
  0x22   :  { %1652 = vmatpush.bf16.msra.mxu0 %v3512_v16  ;;  %1665 = vmatpush.bf16.msra.mxu1 %v3516_v19  ;;  %v4180_v58 = vor.u32 %v5112_v50, %v4177_v51  ;;  %v4041_v59 = vld [vmem:[#allocation2 + $0x590] sm:$0xf0]  ;;  %v4047_v60 = vld [vmem:[#allocation2 + $0x518] sm:$0xf]  ;;  %v5080_v62 = vld [vmem:[#allocation2 + $0x51c] sm:$0xf]  ;;  %v4040_v0 = vor.u32 %v5095_v56, %v4039_v55 }
  0x23   :  { %1678 = vmatpush.bf16.msra.mxu2 %v3520_v20  ;;  %v5096_v61 = vld [vmem:[#allocation2 + $0x594] sm:$0xf0]  ;;  %v4049_v63 = vld [vmem:[#allocation2 + $0x598] sm:$0xf0]  ;;  %v5399_v1 = vld [vmem:[%s5928_s0] sm:$0xf]  ;;  %v4044_v2 = vor.u32 %v5079_v57, %v4041_v59 }
  0x24   :  { %1691 = vmatpush.bf16.msra.mxu3 %v3524_v24  ;;  %v4048_v3 = vor.u32 %v5096_v61, %v4047_v60  ;;  %v3911_v4 = vld [vmem:[#allocation2 + $0x410] sm:$0xf]  ;;  %v5047_v6 = vld [vmem:[#allocation2 + $0x414] sm:$0xf]  ;;  %v4052_v7 = vor.u32 %v5080_v62, %v4049_v63  ;;  %v3919_v9 = vld [vmem:[#allocation2 + $0x418] sm:$0xf] }
  0x25   :  { %v5063_v5 = vld [vmem:[#allocation2 + $0x48c] sm:$0xf0]  ;;  %v3913_v8 = vld [vmem:[#allocation2 + $0x490] sm:$0xf0]  ;;  %v5064_v10 = vld [vmem:[#allocation2 + $0x494] sm:$0xf0] }
  0x26   :  { %1653 = vmatpush.bf16.msra.mxu0 %v3384_v31  ;;  %1666 = vmatpush.bf16.msra.mxu1 %v3388_v35  ;;  %v5048_v11 = vld [vmem:[#allocation2 + $0x41c] sm:$0xf]  ;;  %v3912_v13 = vor.u32 %v5063_v5, %v3911_v4  ;;  %v3916_v14 = vor.u32 %v5047_v6, %v3913_v8  ;;  %v3920_v15 = vor.u32 %v5064_v10, %v3919_v9  ;;  %v3783_v16 = vld [vmem:[#allocation2 + $0x310] sm:$0xf]  ;;  %v5015_v18 = vld [vmem:[#allocation2 + $0x314] sm:$0xf] }
  0x27   :  { %1679 = vmatpush.bf16.msra.mxu2 %v3392_v36  ;;  %v3921_v12 = vld [vmem:[#allocation2 + $0x498] sm:$0xf0]  ;;  %v5031_v17 = vld [vmem:[#allocation2 + $0x38c] sm:$0xf0]  ;;  %v3785_v20 = vld [vmem:[#allocation2 + $0x390] sm:$0xf0] }
  0x28   :  { %1692 = vmatpush.bf16.msra.mxu3 %v3396_v39  ;;  %v3924_v19 = vor.u32 %v5048_v11, %v3921_v12  ;;  %v3791_v21 = vld [vmem:[#allocation2 + $0x318] sm:$0xf]  ;;  %v5016_v23 = vld [vmem:[#allocation2 + $0x31c] sm:$0xf]  ;;  %v3784_v25 = vor.u32 %v5031_v17, %v3783_v16  ;;  %v3788_v26 = vor.u32 %v5015_v18, %v3785_v20  ;;  %v3655_v28 = vld [vmem:[#allocation2 + $0x210] sm:$0xf] }
  0x29   :  { %1654 = vmatmul.bf16.vlgmr.msra.gmra.mxu0 %v5399_v1  ;;  %1667 = vmatmul.bf16.vlgmr.msra.gmra.mxu1 %v5399_v1  ;;  %v5032_v22 = vld [vmem:[#allocation2 + $0x394] sm:$0xf0]  ;;  %v3793_v24 = vld [vmem:[#allocation2 + $0x398] sm:$0xf0]  ;;  %v4999_v29 = vld [vmem:[#allocation2 + $0x28c] sm:$0xf0] }
  0x2a   :  { %1698 = vmatpush.bf16.msrb.mxu0 %v4296_v40  ;;  %1711 = vmatpush.bf16.msrb.mxu1 %v4300_v41  ;;  %v3792_v27 = vor.u32 %v5032_v22, %v3791_v21  ;;  %v4983_v30 = vld [vmem:[#allocation2 + $0x214] sm:$0xf]  ;;  %v3796_v31 = vor.u32 %v5016_v23, %v3793_v24  ;;  %v3663_v33 = vld [vmem:[#allocation2 + $0x218] sm:$0xf]  ;;  %v4984_v35 = vld [vmem:[#allocation2 + $0x21c] sm:$0xf]  ;;  %v3656_v37 = vor.u32 %v4999_v29, %v3655_v28 }
  0x2b   :  { %1724 = vmatpush.bf16.msrb.mxu2 %v4304_v42  ;;  %1693 = vmatmul.bf16.vlgmr.msra.gmra.mxu3 %v5399_v1  ;;  %v3657_v32 = vld [vmem:[#allocation2 + $0x290] sm:$0xf0]  ;;  %v5000_v34 = vld [vmem:[#allocation2 + $0x294] sm:$0xf0]  ;;  %v3665_v36 = vld [vmem:[#allocation2 + $0x298] sm:$0xf0] }
  0x2c   :  { %1737 = vmatpush.bf16.msrb.mxu3 %v4308_v46  ;;  %1680 = vmatmul.bf16.vlgmr.msra.gmra.mxu2 %v5399_v1  ;;  %v3660_v38 = vor.u32 %v4983_v30, %v3657_v32  ;;  %v3664_v39 = vor.u32 %v5000_v34, %v3663_v33  ;;  %v3527_v40 = vld [vmem:[#allocation2 + $0x110] sm:$0xf]  ;;  %v4951_v42 = vld [vmem:[#allocation2 + $0x114] sm:$0xf]  ;;  %v3668_v43 = vor.u32 %v4984_v35, %v3665_v36  ;;  %v3535_v45 = vld [vmem:[#allocation2 + $0x118] sm:$0xf] }
  0x2d   :  { %v4967_v41 = vld [vmem:[#allocation2 + $0x18c] sm:$0xf0]  ;;  %v3529_v44 = vld [vmem:[#allocation2 + $0x190] sm:$0xf0]  ;;  %v4968_v46 = vld [vmem:[#allocation2 + $0x194] sm:$0xf0] }
  0x2e   :  { %1699 = vmatpush.bf16.msrb.mxu0 %v4168_v52  ;;  %1712 = vmatpush.bf16.msrb.mxu1 %v4172_v53  ;;  %v4952_v47 = vld [vmem:[#allocation2 + $0x11c] sm:$0xf]  ;;  %v3528_v49 = vor.u32 %v4967_v41, %v3527_v40  ;;  %v3399_v50 = vld [vmem:[#allocation2 + $0x10] sm:$0xf]  ;;  %v3532_v52 = vor.u32 %v4951_v42, %v3529_v44  ;;  %v3536_v53 = vor.u32 %v4968_v46, %v3535_v45  ;;  %v3401_v55 = vld [vmem:[#allocation2 + $0x90] sm:$0xf0] }
  0x2f   :  { %1725 = vmatpush.bf16.msrb.mxu2 %v4176_v54  ;;  %v3537_v48 = vld [vmem:[#allocation2 + $0x198] sm:$0xf0]  ;;  %v4935_v51 = vld [vmem:[#allocation2 + $0x8c] sm:$0xf0]  ;;  %v4919_v54 = vld [vmem:[#allocation2 + $0x14] sm:$0xf] }
  0x30   :  { %1738 = vmatpush.bf16.msrb.mxu3 %v4180_v58  ;;  %v3407_v56 = vld [vmem:[#allocation2 + $0x18] sm:$0xf]  ;;  %v3540_v57 = vor.u32 %v4952_v47, %v3537_v48  ;;  %v4920_v59 = vld [vmem:[#allocation2 + $0x1c] sm:$0xf]  ;;  %v4311_v61 = vld [vmem:[#allocation2 + $0x720] sm:$0xf]  ;;  %v3404_v5 = vor.u32 %v4919_v54, %v3401_v55 }
  0x31   :  { %v4936_v58 = vld [vmem:[#allocation2 + $0x94] sm:$0xf0]  ;;  %v3409_v60 = vld [vmem:[#allocation2 + $0x98] sm:$0xf0]  ;;  %v5161_v62 = vld [vmem:[#allocation2 + $0x79c] sm:$0xf0] }
  0x32   :  { %1700 = vmatpush.bf16.msrb.mxu0 %v4040_v0  ;;  %1713 = vmatpush.bf16.msrb.mxu1 %v4044_v2  ;;  %v5145_v63 = vld [vmem:[#allocation2 + $0x724] sm:$0xf]  ;;  %v3400_v0 = vor.u32 %v4935_v51, %v3399_v50  ;;  %v5162_v4 = vld [vmem:[#allocation2 + $0x7a4] sm:$0xf0]  ;;  %v3408_v6 = vor.u32 %v4936_v58, %v3407_v56  ;;  %v4321_v8 = vld [vmem:[#allocation2 + $0x7a8] sm:$0xf0]  ;;  %v3412_v9 = vor.u32 %v4920_v59, %v3409_v60 }
  0x33   :  { %1726 = vmatpush.bf16.msrb.mxu2 %v4048_v3  ;;  %v4313_v2 = vld [vmem:[#allocation2 + $0x7a0] sm:$0xf0]  ;;  %v4319_v3 = vld [vmem:[#allocation2 + $0x728] sm:$0xf]  ;;  %v4312_v10 = vor.u32 %v5161_v62, %v4311_v61  ;;  %v5114_v20 = vld [vmem:[#allocation2 + $0x62c] sm:$0xf] }
  0x34   :  { %1739 = vmatpush.bf16.msrb.mxu3 %v4052_v7  ;;  %v5146_v7 = vld [vmem:[#allocation2 + $0x72c] sm:$0xf]  ;;  %v4316_v11 = vor.u32 %v5145_v63, %v4313_v2  ;;  %v4320_v12 = vor.u32 %v5162_v4, %v4319_v3  ;;  %v4185_v17 = vld [vmem:[#allocation2 + $0x6a0] sm:$0xf0]  ;;  %v4191_v18 = vld [vmem:[#allocation2 + $0x628] sm:$0xf] }
  0x35   :  { %v4324_v16 = vor.u32 %v5146_v7, %v4321_v8  ;;  %v4193_v21 = vld [vmem:[#allocation2 + $0x6a8] sm:$0xf0]  ;;  %v4057_v29 = vld [vmem:[#allocation2 + $0x5a0] sm:$0xf0]  ;;  %v4063_v30 = vld [vmem:[#allocation2 + $0x528] sm:$0xf] }
  0x36   :  { %1701 = vmatpush.bf16.msrb.mxu0 %v3912_v13  ;;  %1714 = vmatpush.bf16.msrb.mxu1 %v3916_v14  ;;  %v4183_v13 = vld [vmem:[#allocation2 + $0x620] sm:$0xf]  ;;  %v4196_v28 = vor.u32 %v5114_v20, %v4193_v21  ;;  %v5082_v32 = vld [vmem:[#allocation2 + $0x52c] sm:$0xf]  ;;  %v3929_v41 = vld [vmem:[#allocation2 + $0x4a0] sm:$0xf0] }
  0x37   :  { %1727 = vmatpush.bf16.msrb.mxu2 %v3920_v15  ;;  %v5129_v14 = vld [vmem:[#allocation2 + $0x69c] sm:$0xf0]  ;;  %v5113_v15 = vld [vmem:[#allocation2 + $0x624] sm:$0xf]  ;;  %v4065_v33 = vld [vmem:[#allocation2 + $0x5a8] sm:$0xf0] }
  0x38   :  { %1740 = vmatpush.bf16.msrb.mxu3 %v3924_v19  ;;  %v5130_v19 = vld [vmem:[#allocation2 + $0x6a4] sm:$0xf0]  ;;  %v4184_v22 = vor.u32 %v5129_v14, %v4183_v13  ;;  %v4188_v23 = vor.u32 %v5113_v15, %v4185_v17  ;;  %v4068_v40 = vor.u32 %v5082_v32, %v4065_v33  ;;  %v5050_v44 = vld [vmem:[#allocation2 + $0x42c] sm:$0xf]  ;;  %v5033_v50 = vld [vmem:[#allocation2 + $0x39c] sm:$0xf0] }
  0x39   :  { %v4192_v24 = vor.u32 %v5130_v19, %v4191_v18  ;;  %v3935_v42 = vld [vmem:[#allocation2 + $0x428] sm:$0xf]  ;;  %v3937_v45 = vld [vmem:[#allocation2 + $0x4a8] sm:$0xf0]  ;;  %v5017_v51 = vld [vmem:[#allocation2 + $0x324] sm:$0xf] }
  0x3a   :  { %1702 = vmatpush.bf16.msrb.mxu0 %v3784_v25  ;;  %1715 = vmatpush.bf16.msrb.mxu1 %v3788_v26  ;;  %v4055_v25 = vld [vmem:[#allocation2 + $0x520] sm:$0xf]  ;;  %v3807_v54 = vld [vmem:[#allocation2 + $0x328] sm:$0xf]  ;;  %v5018_v56 = vld [vmem:[#allocation2 + $0x32c] sm:$0xf] }
  0x3b   :  { %1728 = vmatpush.bf16.msrb.mxu2 %v3792_v27  ;;  %v5097_v26 = vld [vmem:[#allocation2 + $0x59c] sm:$0xf0]  ;;  %v5081_v27 = vld [vmem:[#allocation2 + $0x524] sm:$0xf]  ;;  %v5034_v55 = vld [vmem:[#allocation2 + $0x3a4] sm:$0xf0] }
  0x3c   :  { %1741 = vmatpush.bf16.msrb.mxu3 %v3796_v31  ;;  %v5098_v31 = vld [vmem:[#allocation2 + $0x5a4] sm:$0xf0]  ;;  %v4056_v34 = vor.u32 %v5097_v26, %v4055_v25  ;;  %v4060_v35 = vor.u32 %v5081_v27, %v4057_v29  ;;  %v3808_v60 = vor.u32 %v5034_v55, %v3807_v54  ;;  %v3671_v61 = vld [vmem:[#allocation2 + $0x220] sm:$0xf]  ;;  %v4985_v63 = vld [vmem:[#allocation2 + $0x224] sm:$0xf] }
  0x3d   :  { %v4064_v36 = vor.u32 %v5098_v31, %v4063_v30  ;;  %v5001_v62 = vld [vmem:[#allocation2 + $0x29c] sm:$0xf0]  ;;  %v3673_v2 = vld [vmem:[#allocation2 + $0x2a0] sm:$0xf0]  ;;  %v3679_v3 = vld [vmem:[#allocation2 + $0x228] sm:$0xf] }
  0x3e   :  { %1703 = vmatpush.bf16.msrb.mxu0 %v3656_v37  ;;  %1716 = vmatpush.bf16.msrb.mxu1 %v3660_v38  ;;  %v3927_v37 = vld [vmem:[#allocation2 + $0x420] sm:$0xf]  ;;  %v5002_v4 = vld [vmem:[#allocation2 + $0x2a4] sm:$0xf0]  ;;  %v3672_v7 = vor.u32 %v5001_v62, %v3671_v61  ;;  %v3676_v8 = vor.u32 %v4985_v63, %v3673_v2  ;;  %v3545_v14 = vld [vmem:[#allocation2 + $0x1a0] sm:$0xf0] }
  0x3f   :  { %1729 = vmatpush.bf16.msrb.mxu2 %v3664_v39  ;;  %v5065_v38 = vld [vmem:[#allocation2 + $0x49c] sm:$0xf0]  ;;  %v5049_v39 = vld [vmem:[#allocation2 + $0x424] sm:$0xf]  ;;  %v3551_v15 = vld [vmem:[#allocation2 + $0x128] sm:$0xf] }
  0x40   :  { %1742 = vmatpush.bf16.msrb.mxu3 %v3668_v43  ;;  %v5066_v43 = vld [vmem:[#allocation2 + $0x4a4] sm:$0xf0]  ;;  %v3928_v46 = vor.u32 %v5065_v38, %v3927_v37  ;;  %v3932_v47 = vor.u32 %v5049_v39, %v3929_v41  ;;  %v4954_v17 = vld [vmem:[#allocation2 + $0x12c] sm:$0xf]  ;;  %v3415_v20 = vld [vmem:[#allocation2 + $0x20] sm:$0xf] }
  0x41   :  { %v3936_v48 = vor.u32 %v5066_v43, %v3935_v42  ;;  %v3553_v18 = vld [vmem:[#allocation2 + $0x1a8] sm:$0xf0]  ;;  %v4937_v21 = vld [vmem:[#allocation2 + $0x9c] sm:$0xf0]  ;;  %v3417_v25 = vld [vmem:[#allocation2 + $0xa0] sm:$0xf0] }
  0x42   :  { %1704 = vmatpush.bf16.msrb.mxu0 %v3528_v49  ;;  %1717 = vmatpush.bf16.msrb.mxu1 %v3532_v52  ;;  %v3799_v49 = vld [vmem:[#allocation2 + $0x320] sm:$0xf]  ;;  %v3940_v52 = vor.u32 %v5050_v44, %v3937_v45  ;;  %v3423_v26 = vld [vmem:[#allocation2 + $0x28] sm:$0xf]  ;;  %v3556_v27 = vor.u32 %v4954_v17, %v3553_v18  ;;  %v4922_v29 = vld [vmem:[#allocation2 + $0x2c] sm:$0xf] }
  0x43   :  { %1730 = vmatpush.bf16.msrb.mxu2 %v3536_v53  ;;  %v3801_v53 = vld [vmem:[#allocation2 + $0x3a0] sm:$0xf0]  ;;  %v3800_v58 = vor.u32 %v5033_v50, %v3799_v49  ;;  %v3425_v30 = vld [vmem:[#allocation2 + $0xa8] sm:$0xf0]  ;;  %v4327_v31 = vld [vmem:[#allocation2 + $0x730] sm:$0xf] }
  0x44   :  { %1743 = vmatpush.bf16.msrb.mxu3 %v3540_v57  ;;  %v3809_v57 = vld [vmem:[#allocation2 + $0x3a8] sm:$0xf0]  ;;  %v3804_v59 = vor.u32 %v5017_v51, %v3801_v53  ;;  %v5163_v32 = vld [vmem:[#allocation2 + $0x7ac] sm:$0xf0]  ;;  %v5147_v33 = vld [vmem:[#allocation2 + $0x734] sm:$0xf]  ;;  %v3428_v42 = vor.u32 %v4922_v29, %v3425_v30 }
  0x45   :  { %v5164_v37 = vld [vmem:[#allocation2 + $0x7b4] sm:$0xf0]  ;;  %v4337_v41 = vld [vmem:[#allocation2 + $0x7b8] sm:$0xf0]  ;;  %v4328_v43 = vor.u32 %v5163_v32, %v4327_v31  ;;  %v4201_v50 = vld [vmem:[#allocation2 + $0x6b0] sm:$0xf0] }
  0x46   :  { %1705 = vmatpush.bf16.msrb.mxu0 %v3400_v0  ;;  %1718 = vmatpush.bf16.msrb.mxu1 %v3404_v5  ;;  %v3812_v0 = vor.u32 %v5018_v56, %v3809_v57  ;;  %v4986_v5 = vld [vmem:[#allocation2 + $0x22c] sm:$0xf]  ;;  %v4207_v51 = vld [vmem:[#allocation2 + $0x638] sm:$0xf]  ;;  %v5116_v53 = vld [vmem:[#allocation2 + $0x63c] sm:$0xf] }
  0x47   :  { %1731 = vmatpush.bf16.msrb.mxu2 %v3408_v6  ;;  %v3681_v6 = vld [vmem:[#allocation2 + $0x2a8] sm:$0xf0]  ;;  %v4209_v54 = vld [vmem:[#allocation2 + $0x6b8] sm:$0xf0]  ;;  %v4073_v62 = vld [vmem:[#allocation2 + $0x5b0] sm:$0xf0] }
  0x48   :  { %1744 = vmatpush.bf16.msrb.mxu3 %v3412_v9  ;;  %v3680_v9 = vor.u32 %v5002_v4, %v3679_v3  ;;  %v3684_v13 = vor.u32 %v4986_v5, %v3681_v6  ;;  %v4212_v61 = vor.u32 %v5116_v53, %v4209_v54  ;;  %v4079_v63 = vld [vmem:[#allocation2 + $0x538] sm:$0xf]  ;;  %v5084_v2 = vld [vmem:[#allocation2 + $0x53c] sm:$0xf]  ;;  %v3687_v31 = vld [vmem:[#allocation2 + $0x230] sm:$0xf] }
  0x49   :  { %1706 = vmatmul.bf16.vlgmr.msrb.gmra.mxu0 %v5399_v1  ;;  %1719 = vmatmul.bf16.vlgmr.msrb.gmra.mxu1 %v5399_v1  ;;  %v4081_v3 = vld [vmem:[#allocation2 + $0x5b8] sm:$0xf0]  ;;  %v5003_v32 = vld [vmem:[#allocation2 + $0x2ac] sm:$0xf0]  ;;  %s3371_s1 = sshll.u32 %s5933_s5, 4  ;;  %vm3362_vm0 = vcmask 64512   ;;  %s3372_s1 = int_to_ptr.hbm [resolvable:$true] %s3371_s1 }
  0x4a   :  { %1750 = vmatpush.bf16.msra.mxu0 %v4312_v10  ;;  %1763 = vmatpush.bf16.msra.mxu1 %v4316_v11  ;;  %v3543_v10 = vld [vmem:[#allocation2 + $0x120] sm:$0xf]  ;;  %v3431_v53 = vld [vmem:[#allocation2 + $0x30] sm:$0xf] }
  0x4b   :  { %1776 = vmatpush.bf16.msra.mxu2 %v4320_v12  ;;  %1745 = vmatmul.bf16.vlgmr.msrb.gmra.mxu3 %v5399_v1  ;;  %v4969_v11 = vld [vmem:[#allocation2 + $0x19c] sm:$0xf0]  ;;  %v4953_v12 = vld [vmem:[#allocation2 + $0x124] sm:$0xf]  ;;  %v4939_v54 = vld [vmem:[#allocation2 + $0xac] sm:$0xf0] }
  0x4c   :  { %1789 = vmatpush.bf16.msra.mxu3 %v4324_v16  ;;  %1732 = vmatmul.bf16.vlgmr.msrb.gmra.mxu2 %v5399_v1  ;;  %v4970_v16 = vld [vmem:[#allocation2 + $0x1a4] sm:$0xf0]  ;;  %v3544_v19 = vor.u32 %v4969_v11, %v3543_v10  ;;  %v4084_v10 = vor.u32 %v5084_v2, %v4081_v3  ;;  %v3945_v11 = vld [vmem:[#allocation2 + $0x4b0] sm:$0xf0]  ;;  %v5165_v2 = vld [vmem:[#allocation2 + $0x7bc] sm:$0xf0] }
  0x4d   :  { %v5149_v3 = vld [vmem:[#allocation2 + $0x744] sm:$0xf] }
  0x4e   :  { %1751 = vmatpush.bf16.msra.mxu0 %v4184_v22  ;;  %1764 = vmatpush.bf16.msra.mxu1 %v4188_v23  ;;  %v3548_v22 = vor.u32 %v4953_v12, %v3545_v14  ;;  %v3552_v23 = vor.u32 %v4970_v16, %v3551_v15  ;;  %v3951_v12 = vld [vmem:[#allocation2 + $0x438] sm:$0xf]  ;;  %v5052_v14 = vld [vmem:[#allocation2 + $0x43c] sm:$0xf] }
  0x4f   :  { %1777 = vmatpush.bf16.msra.mxu2 %v4192_v24  ;;  %v4921_v24 = vld [vmem:[#allocation2 + $0x24] sm:$0xf]  ;;  %v3953_v15 = vld [vmem:[#allocation2 + $0x4b8] sm:$0xf0] }
  0x50   :  { %1790 = vmatpush.bf16.msra.mxu3 %v4196_v28  ;;  %v4938_v28 = vld [vmem:[#allocation2 + $0xa4] sm:$0xf0]  ;;  %v3420_v38 = vor.u32 %v4921_v24, %v3417_v25  ;;  %v3823_v24 = vld [vmem:[#allocation2 + $0x338] sm:$0xf] }
  0x51   :  { %v3424_v39 = vor.u32 %v4938_v28, %v3423_v26  ;;  %v5036_v25 = vld [vmem:[#allocation2 + $0x3b4] sm:$0xf0]  ;;  %v5020_v26 = vld [vmem:[#allocation2 + $0x33c] sm:$0xf] }
  0x52   :  { %1752 = vmatpush.bf16.msra.mxu0 %v4056_v34  ;;  %1765 = vmatpush.bf16.msra.mxu1 %v4060_v35  ;;  %v3416_v34 = vor.u32 %v4937_v21, %v3415_v20  ;;  %v4329_v35 = vld [vmem:[#allocation2 + $0x7b0] sm:$0xf0]  ;;  %v5035_v20 = vld [vmem:[#allocation2 + $0x3ac] sm:$0xf0]  ;;  %v3824_v30 = vor.u32 %v5036_v25, %v3823_v24  ;;  %v4225_v24 = vld [vmem:[#allocation2 + $0x6c8] sm:$0xf0] }
  0x53   :  { %1778 = vmatpush.bf16.msra.mxu2 %v4064_v36  ;;  %v4335_v36 = vld [vmem:[#allocation2 + $0x738] sm:$0xf]  ;;  %v4332_v44 = vor.u32 %v5147_v33, %v4329_v35  ;;  %v5019_v21 = vld [vmem:[#allocation2 + $0x334] sm:$0xf] }
  0x54   :  { %1791 = vmatpush.bf16.msra.mxu3 %v4068_v40  ;;  %v5148_v40 = vld [vmem:[#allocation2 + $0x73c] sm:$0xf]  ;;  %v4336_v45 = vor.u32 %v5164_v37, %v4335_v36  ;;  %v4987_v33 = vld [vmem:[#allocation2 + $0x234] sm:$0xf]  ;;  %v3695_v36 = vld [vmem:[#allocation2 + $0x238] sm:$0xf] }
  0x55   :  { %v4340_v49 = vor.u32 %v5148_v40, %v4337_v41  ;;  %v3689_v35 = vld [vmem:[#allocation2 + $0x2b0] sm:$0xf0]  ;;  %v5004_v37 = vld [vmem:[#allocation2 + $0x2b4] sm:$0xf0]  ;;  %v3688_v40 = vor.u32 %v5003_v32, %v3687_v31  ;;  %v4089_v32 = vld [vmem:[#allocation2 + $0x5c0] sm:$0xf0] }
  0x56   :  { %1753 = vmatpush.bf16.msra.mxu0 %v3928_v46  ;;  %1766 = vmatpush.bf16.msra.mxu1 %v3932_v47  ;;  %v4199_v46 = vld [vmem:[#allocation2 + $0x630] sm:$0xf]  ;;  %v3692_v41 = vor.u32 %v4987_v33, %v3689_v35  ;;  %v4095_v33 = vld [vmem:[#allocation2 + $0x548] sm:$0xf]  ;;  %v5086_v35 = vld [vmem:[#allocation2 + $0x54c] sm:$0xf] }
  0x57   :  { %1779 = vmatpush.bf16.msra.mxu2 %v3936_v48  ;;  %v5131_v47 = vld [vmem:[#allocation2 + $0x6ac] sm:$0xf0]  ;;  %v5115_v48 = vld [vmem:[#allocation2 + $0x634] sm:$0xf] }
  0x58   :  { %1792 = vmatpush.bf16.msra.mxu3 %v3940_v52  ;;  %v5132_v52 = vld [vmem:[#allocation2 + $0x6b4] sm:$0xf0]  ;;  %v4200_v55 = vor.u32 %v5131_v47, %v4199_v46  ;;  %v4204_v56 = vor.u32 %v5115_v48, %v4201_v50  ;;  %v3561_v47 = vld [vmem:[#allocation2 + $0x1b0] sm:$0xf0]  ;;  %v4956_v50 = vld [vmem:[#allocation2 + $0x13c] sm:$0xf] }
  0x59   :  { %v4208_v57 = vor.u32 %v5132_v52, %v4207_v51  ;;  %v3567_v48 = vld [vmem:[#allocation2 + $0x138] sm:$0xf]  ;;  %v3569_v51 = vld [vmem:[#allocation2 + $0x1b8] sm:$0xf0] }
  0x5a   :  { %1754 = vmatpush.bf16.msra.mxu0 %v3800_v58  ;;  %1767 = vmatpush.bf16.msra.mxu1 %v3804_v59  ;;  %v4071_v58 = vld [vmem:[#allocation2 + $0x530] sm:$0xf] }
  0x5b   :  { %1780 = vmatpush.bf16.msra.mxu2 %v3808_v60  ;;  %v5099_v59 = vld [vmem:[#allocation2 + $0x5ac] sm:$0xf0]  ;;  %v5083_v60 = vld [vmem:[#allocation2 + $0x534] sm:$0xf] }
  0x5c   :  { %1793 = vmatpush.bf16.msra.mxu3 %v3812_v0  ;;  %v5100_v0 = vld [vmem:[#allocation2 + $0x5b4] sm:$0xf0]  ;;  %v4072_v4 = vor.u32 %v5099_v59, %v4071_v58  ;;  %v4076_v5 = vor.u32 %v5083_v60, %v4073_v62  ;;  %v3433_v58 = vld [vmem:[#allocation2 + $0xb0] sm:$0xf0]  ;;  %v3572_v60 = vor.u32 %v4956_v50, %v3569_v51  ;;  %v4924_v62 = vld [vmem:[#allocation2 + $0x3c] sm:$0xf] }
  0x5d   :  { %v4080_v6 = vor.u32 %v5100_v0, %v4079_v63  ;;  %v3439_v59 = vld [vmem:[#allocation2 + $0x38] sm:$0xf]  ;;  %v3441_v63 = vld [vmem:[#allocation2 + $0xb8] sm:$0xf0]  ;;  %v4343_v0 = vld [vmem:[#allocation2 + $0x740] sm:$0xf] }
  0x5e   :  { %1755 = vmatpush.bf16.msra.mxu0 %v3672_v7  ;;  %1768 = vmatpush.bf16.msra.mxu1 %v3676_v8  ;;  %v3943_v7 = vld [vmem:[#allocation2 + $0x430] sm:$0xf]  ;;  %v3831_v51 = vld [vmem:[#allocation2 + $0x340] sm:$0xf] }
  0x5f   :  { %1781 = vmatpush.bf16.msra.mxu2 %v3680_v9  ;;  %v5067_v8 = vld [vmem:[#allocation2 + $0x4ac] sm:$0xf0]  ;;  %v5051_v9 = vld [vmem:[#allocation2 + $0x434] sm:$0xf] }
  0x60   :  { %1794 = vmatpush.bf16.msra.mxu3 %v3684_v13  ;;  %v5068_v13 = vld [vmem:[#allocation2 + $0x4b4] sm:$0xf0]  ;;  %v3944_v16 = vor.u32 %v5067_v8, %v3943_v7  ;;  %v3948_v17 = vor.u32 %v5051_v9, %v3945_v11  ;;  %v5166_v7 = vld [vmem:[#allocation2 + $0x7c4] sm:$0xf0]  ;;  %v4353_v11 = vld [vmem:[#allocation2 + $0x7c8] sm:$0xf0] }
  0x61   :  { %v3952_v18 = vor.u32 %v5068_v13, %v3951_v12  ;;  %v3444_v12 = vor.u32 %v4924_v62, %v3441_v63  ;;  %v4344_v13 = vor.u32 %v5165_v2, %v4343_v0  ;;  %v3703_v63 = vld [vmem:[#allocation2 + $0x240] sm:$0xf]  ;;  %v4989_v2 = vld [vmem:[#allocation2 + $0x244] sm:$0xf] }
  0x62   :  { %1756 = vmatpush.bf16.msra.mxu0 %v3544_v19  ;;  %1769 = vmatpush.bf16.msra.mxu1 %v3548_v22  ;;  %v3815_v19 = vld [vmem:[#allocation2 + $0x330] sm:$0xf]  ;;  %v3956_v22 = vor.u32 %v5052_v14, %v3953_v15  ;;  %v5005_v0 = vld [vmem:[#allocation2 + $0x2bc] sm:$0xf0] }
  0x63   :  { %1782 = vmatpush.bf16.msra.mxu2 %v3552_v23  ;;  %v3817_v23 = vld [vmem:[#allocation2 + $0x3b0] sm:$0xf0]  ;;  %v3816_v28 = vor.u32 %v5035_v20, %v3815_v19  ;;  %v4217_v20 = vld [vmem:[#allocation2 + $0x6c0] sm:$0xf0] }
  0x64   :  { %1795 = vmatpush.bf16.msra.mxu3 %v3556_v27  ;;  %v3825_v27 = vld [vmem:[#allocation2 + $0x3b8] sm:$0xf0]  ;;  %v3820_v29 = vor.u32 %v5019_v21, %v3817_v23  ;;  %v4223_v21 = vld [vmem:[#allocation2 + $0x648] sm:$0xf]  ;;  %v5118_v23 = vld [vmem:[#allocation2 + $0x64c] sm:$0xf] }
  0x65   :  { %v4228_v31 = vor.u32 %v5118_v23, %v4225_v24  ;;  %v4941_v23 = vld [vmem:[#allocation2 + $0xbc] sm:$0xf0] }
  0x66   :  { %1757 = vmatpush.bf16.msra.mxu0 %v3416_v34  ;;  %1770 = vmatpush.bf16.msra.mxu1 %v3420_v38  ;;  %v3828_v34 = vor.u32 %v5020_v26, %v3825_v27  ;;  %v4988_v38 = vld [vmem:[#allocation2 + $0x23c] sm:$0xf] }
  0x67   :  { %1783 = vmatpush.bf16.msra.mxu2 %v3424_v39  ;;  %v3697_v39 = vld [vmem:[#allocation2 + $0x2b8] sm:$0xf0] }
  0x68   :  { %1796 = vmatpush.bf16.msra.mxu3 %v3428_v42  ;;  %v3696_v42 = vor.u32 %v5004_v37, %v3695_v36  ;;  %v3700_v46 = vor.u32 %v4988_v38, %v3697_v39  ;;  %v4097_v36 = vld [vmem:[#allocation2 + $0x5c8] sm:$0xf0] }
  0x69   :  { %1758 = vmatmul.bf16.vlgmr.msra.gmra.mxu0 %v5399_v1  ;;  %1771 = vmatmul.bf16.vlgmr.msra.gmra.mxu1 %v5399_v1 }
  0x6a   :  { %1802 = vmatpush.bf16.msrb.mxu0 %v4328_v43  ;;  %1815 = vmatpush.bf16.msrb.mxu1 %v4332_v44  ;;  %v3559_v43 = vld [vmem:[#allocation2 + $0x130] sm:$0xf] }
  0x6b   :  { %1828 = vmatpush.bf16.msrb.mxu2 %v4336_v45  ;;  %1797 = vmatmul.bf16.vlgmr.msra.gmra.mxu3 %v5399_v1  ;;  %v4971_v44 = vld [vmem:[#allocation2 + $0x1ac] sm:$0xf0]  ;;  %v4955_v45 = vld [vmem:[#allocation2 + $0x134] sm:$0xf] }
  0x6c   :  { %1841 = vmatpush.bf16.msrb.mxu3 %v4340_v49  ;;  %1784 = vmatmul.bf16.vlgmr.msra.gmra.mxu2 %v5399_v1  ;;  %v4972_v49 = vld [vmem:[#allocation2 + $0x1b4] sm:$0xf0]  ;;  %v3560_v52 = vor.u32 %v4971_v44, %v3559_v43  ;;  %v4100_v43 = vor.u32 %v5086_v35, %v4097_v36  ;;  %v3961_v44 = vld [vmem:[#allocation2 + $0x4c0] sm:$0xf0]  ;;  %v5151_v35 = vld [vmem:[#allocation2 + $0x754] sm:$0xf] }
  0x6e   :  { %1803 = vmatpush.bf16.msrb.mxu0 %v4200_v55  ;;  %1816 = vmatpush.bf16.msrb.mxu1 %v4204_v56  ;;  %v3564_v55 = vor.u32 %v4955_v45, %v3561_v47  ;;  %v3568_v56 = vor.u32 %v4972_v49, %v3567_v48  ;;  %v3967_v45 = vld [vmem:[#allocation2 + $0x448] sm:$0xf]  ;;  %v5054_v47 = vld [vmem:[#allocation2 + $0x44c] sm:$0xf] }
  0x6f   :  { %1829 = vmatpush.bf16.msrb.mxu2 %v4208_v57  ;;  %v4923_v57 = vld [vmem:[#allocation2 + $0x34] sm:$0xf]  ;;  %v3969_v48 = vld [vmem:[#allocation2 + $0x4c8] sm:$0xf0] }
  0x70   :  { %1842 = vmatpush.bf16.msrb.mxu3 %v4212_v61  ;;  %v4940_v61 = vld [vmem:[#allocation2 + $0xb4] sm:$0xf0]  ;;  %v3436_v8 = vor.u32 %v4923_v57, %v3433_v58  ;;  %v5038_v57 = vld [vmem:[#allocation2 + $0x3c4] sm:$0xf0]  ;;  %v5022_v58 = vld [vmem:[#allocation2 + $0x34c] sm:$0xf] }
  0x71   :  { %v3440_v9 = vor.u32 %v4940_v61, %v3439_v59  ;;  %v3841_v59 = vld [vmem:[#allocation2 + $0x3c8] sm:$0xf0] }
  0x72   :  { %1804 = vmatpush.bf16.msrb.mxu0 %v4072_v4  ;;  %1817 = vmatpush.bf16.msrb.mxu1 %v4076_v5  ;;  %v3432_v4 = vor.u32 %v4939_v54, %v3431_v53  ;;  %v4345_v5 = vld [vmem:[#allocation2 + $0x7c0] sm:$0xf0]  ;;  %v3972_v54 = vor.u32 %v5054_v47, %v3969_v48  ;;  %v4231_v48 = vld [vmem:[#allocation2 + $0x650] sm:$0xf] }
  0x73   :  { %1830 = vmatpush.bf16.msrb.mxu2 %v4080_v6  ;;  %v4351_v6 = vld [vmem:[#allocation2 + $0x748] sm:$0xf]  ;;  %v4348_v14 = vor.u32 %v5149_v3, %v4345_v5  ;;  %v5021_v53 = vld [vmem:[#allocation2 + $0x344] sm:$0xf]  ;;  %v3844_v3 = vor.u32 %v5022_v58, %v3841_v59  ;;  %v4103_v59 = vld [vmem:[#allocation2 + $0x550] sm:$0xf] }
  0x74   :  { %1843 = vmatpush.bf16.msrb.mxu3 %v4084_v10  ;;  %v5150_v10 = vld [vmem:[#allocation2 + $0x74c] sm:$0xf]  ;;  %v4352_v15 = vor.u32 %v5166_v7, %v4351_v6  ;;  %v3711_v5 = vld [vmem:[#allocation2 + $0x248] sm:$0xf] }
  0x75   :  { %v4356_v19 = vor.u32 %v5150_v10, %v4353_v11  ;;  %v5006_v6 = vld [vmem:[#allocation2 + $0x2c4] sm:$0xf0]  ;;  %v4990_v7 = vld [vmem:[#allocation2 + $0x24c] sm:$0xf] }
  0x76   :  { %1805 = vmatpush.bf16.msrb.mxu0 %v3944_v16  ;;  %1818 = vmatpush.bf16.msrb.mxu1 %v3948_v17  ;;  %v4215_v16 = vld [vmem:[#allocation2 + $0x640] sm:$0xf]  ;;  %v3712_v11 = vor.u32 %v5006_v6, %v3711_v5  ;;  %v4113_v5 = vld [vmem:[#allocation2 + $0x5d8] sm:$0xf0] }
  0x77   :  { %1831 = vmatpush.bf16.msrb.mxu2 %v3952_v18  ;;  %v5133_v17 = vld [vmem:[#allocation2 + $0x6bc] sm:$0xf0]  ;;  %v5117_v18 = vld [vmem:[#allocation2 + $0x644] sm:$0xf] }
  0x78   :  { %1844 = vmatpush.bf16.msrb.mxu3 %v3956_v22  ;;  %v5134_v22 = vld [vmem:[#allocation2 + $0x6c4] sm:$0xf0]  ;;  %v4216_v25 = vor.u32 %v5133_v17, %v4215_v16  ;;  %v4220_v26 = vor.u32 %v5117_v18, %v4217_v20  ;;  %v3577_v16 = vld [vmem:[#allocation2 + $0x1c0] sm:$0xf0]  ;;  %v3585_v20 = vld [vmem:[#allocation2 + $0x1c8] sm:$0xf0] }
  0x79   :  { %v4224_v27 = vor.u32 %v5134_v22, %v4223_v21  ;;  %v3583_v17 = vld [vmem:[#allocation2 + $0x148] sm:$0xf]  ;;  %v3447_v22 = vld [vmem:[#allocation2 + $0x40] sm:$0xf] }
  0x7a   :  { %1806 = vmatpush.bf16.msrb.mxu0 %v3816_v28  ;;  %1819 = vmatpush.bf16.msrb.mxu1 %v3820_v29  ;;  %v4087_v28 = vld [vmem:[#allocation2 + $0x540] sm:$0xf]  ;;  %v4974_v18 = vld [vmem:[#allocation2 + $0x1c4] sm:$0xf0]  ;;  %v3448_v36 = vor.u32 %v4941_v23, %v3447_v22  ;;  %v5039_v22 = vld [vmem:[#allocation2 + $0x3cc] sm:$0xf0] }
  0x7b   :  { %1832 = vmatpush.bf16.msrb.mxu2 %v3824_v30  ;;  %v5101_v29 = vld [vmem:[#allocation2 + $0x5bc] sm:$0xf0]  ;;  %v5085_v30 = vld [vmem:[#allocation2 + $0x544] sm:$0xf]  ;;  %v5023_v23 = vld [vmem:[#allocation2 + $0x354] sm:$0xf] }
  0x7c   :  { %1845 = vmatpush.bf16.msrb.mxu3 %v3828_v34  ;;  %v5102_v34 = vld [vmem:[#allocation2 + $0x5c4] sm:$0xf0]  ;;  %v4088_v37 = vor.u32 %v5101_v29, %v4087_v28  ;;  %v4092_v38 = vor.u32 %v5085_v30, %v4089_v32  ;;  %v3457_v32 = vld [vmem:[#allocation2 + $0xc8] sm:$0xf0] }
  0x7d   :  { %v4096_v39 = vor.u32 %v5102_v34, %v4095_v33  ;;  %v3455_v28 = vld [vmem:[#allocation2 + $0x48] sm:$0xf]  ;;  %v4359_v33 = vld [vmem:[#allocation2 + $0x750] sm:$0xf] }
  0x7e   :  { %1807 = vmatpush.bf16.msrb.mxu0 %v3688_v40  ;;  %1820 = vmatpush.bf16.msrb.mxu1 %v3692_v41  ;;  %v3959_v40 = vld [vmem:[#allocation2 + $0x440] sm:$0xf]  ;;  %v4942_v30 = vld [vmem:[#allocation2 + $0xc4] sm:$0xf0]  ;;  %v5167_v34 = vld [vmem:[#allocation2 + $0x7cc] sm:$0xf0] }
  0x7f   :  { %1833 = vmatpush.bf16.msrb.mxu2 %v3696_v42  ;;  %v5069_v41 = vld [vmem:[#allocation2 + $0x4bc] sm:$0xf0]  ;;  %v5053_v42 = vld [vmem:[#allocation2 + $0x444] sm:$0xf] }
  0x80   :  { %1846 = vmatpush.bf16.msrb.mxu3 %v3700_v46  ;;  %v5070_v46 = vld [vmem:[#allocation2 + $0x4c4] sm:$0xf0]  ;;  %v3960_v49 = vor.u32 %v5069_v41, %v3959_v40  ;;  %v3964_v50 = vor.u32 %v5053_v42, %v3961_v44  ;;  %v3456_v41 = vor.u32 %v4942_v30, %v3455_v28  ;;  %v5152_v42 = vld [vmem:[#allocation2 + $0x75c] sm:$0xf] }
  0x81   :  { %v5024_v28 = vld [vmem:[#allocation2 + $0x35c] sm:$0xf] }
  0x82   :  { %1808 = vmatpush.bf16.msrb.mxu0 %v3560_v52  ;;  %1821 = vmatpush.bf16.msrb.mxu1 %v3564_v55  ;;  %v5037_v52 = vld [vmem:[#allocation2 + $0x3bc] sm:$0xf0]  ;;  %v3833_v55 = vld [vmem:[#allocation2 + $0x3c0] sm:$0xf0] }
  0x83   :  { %1834 = vmatpush.bf16.msrb.mxu2 %v3568_v56  ;;  %v3839_v56 = vld [vmem:[#allocation2 + $0x348] sm:$0xf]  ;;  %v3836_v61 = vor.u32 %v5021_v53, %v3833_v55  ;;  %v5136_v53 = vld [vmem:[#allocation2 + $0x6d4] sm:$0xf0]  ;;  %v4241_v55 = vld [vmem:[#allocation2 + $0x6d8] sm:$0xf0] }
  0x84   :  { %1847 = vmatpush.bf16.msrb.mxu3 %v3572_v60  ;;  %v3832_v60 = vor.u32 %v5037_v52, %v3831_v51  ;;  %v3840_v62 = vor.u32 %v5038_v57, %v3839_v56  ;;  %v4233_v51 = vld [vmem:[#allocation2 + $0x6d0] sm:$0xf0]  ;;  %v4239_v52 = vld [vmem:[#allocation2 + $0x658] sm:$0xf] }
  0x85   :  { %v4240_v58 = vor.u32 %v5136_v53, %v4239_v52  ;;  %v3599_v52 = vld [vmem:[#allocation2 + $0x158] sm:$0xf] }
  0x86   :  { %1809 = vmatpush.bf16.msrb.mxu0 %v3432_v4  ;;  %1822 = vmatpush.bf16.msrb.mxu1 %v3436_v8  ;;  %v3705_v4 = vld [vmem:[#allocation2 + $0x2c0] sm:$0xf0]  ;;  %v3713_v8 = vld [vmem:[#allocation2 + $0x2c8] sm:$0xf0]  ;;  %v4976_v53 = vld [vmem:[#allocation2 + $0x1d4] sm:$0xf0] }
  0x87   :  { %1835 = vmatpush.bf16.msrb.mxu2 %v3440_v9  ;;  %v3704_v9 = vor.u32 %v5005_v0, %v3703_v63  ;;  %v3708_v10 = vor.u32 %v4989_v2, %v3705_v4  ;;  %v4105_v0 = vld [vmem:[#allocation2 + $0x5d0] sm:$0xf0]  ;;  %v4111_v2 = vld [vmem:[#allocation2 + $0x558] sm:$0xf]  ;;  %v5088_v4 = vld [vmem:[#allocation2 + $0x55c] sm:$0xf] }
  0x88   :  { %1848 = vmatpush.bf16.msrb.mxu3 %v3444_v12  ;;  %v3575_v12 = vld [vmem:[#allocation2 + $0x140] sm:$0xf] }
  0x89   :  { %1810 = vmatmul.bf16.vlgmr.msrb.gmra.mxu0 %v5399_v1  ;;  %1823 = vmatmul.bf16.vlgmr.msrb.gmra.mxu1 %v5399_v1 }
  0x8a   :  { %1854 = vmatpush.bf16.msra.mxu0 %v4344_v13  ;;  %1867 = vmatpush.bf16.msra.mxu1 %v4348_v14  ;;  %v4973_v13 = vld [vmem:[#allocation2 + $0x1bc] sm:$0xf0]  ;;  %v4957_v14 = vld [vmem:[#allocation2 + $0x144] sm:$0xf] }
  0x8b   :  { %1880 = vmatpush.bf16.msra.mxu2 %v4352_v15  ;;  %1849 = vmatmul.bf16.vlgmr.msrb.gmra.mxu3 %v5399_v1  ;;  %v3716_v15 = vor.u32 %v4990_v7, %v3713_v8  ;;  %v3576_v21 = vor.u32 %v4973_v13, %v3575_v12  ;;  %v3580_v24 = vor.u32 %v4957_v14, %v3577_v16  ;;  %v3977_v13 = vld [vmem:[#allocation2 + $0x4d0] sm:$0xf0]  ;;  %v3983_v14 = vld [vmem:[#allocation2 + $0x458] sm:$0xf]  ;;  %v5056_v16 = vld [vmem:[#allocation2 + $0x45c] sm:$0xf] }
  0x8c   :  { %1893 = vmatpush.bf16.msra.mxu3 %v4356_v19  ;;  %1836 = vmatmul.bf16.vlgmr.msrb.gmra.mxu2 %v5399_v1  ;;  %v3968_v1 = vor.u32 %v5070_v46, %v3967_v45  ;;  %v4958_v19 = vld [vmem:[#allocation2 + $0x14c] sm:$0xf]  ;;  %v4360_v45 = vor.u32 %v5167_v34, %v4359_v33  ;;  %v4116_v12 = vor.u32 %v5088_v4, %v4113_v5  ;;  %v3719_v34 = vld [vmem:[#allocation2 + $0x250] sm:$0xf] }
  0x8d   :  { %v3588_v29 = vor.u32 %v4958_v19, %v3585_v20 }
  0x8e   :  { %1855 = vmatpush.bf16.msra.mxu0 %v4216_v25  ;;  %1868 = vmatpush.bf16.msra.mxu1 %v4220_v26  ;;  %v3584_v25 = vor.u32 %v4974_v18, %v3583_v17  ;;  %v4925_v26 = vld [vmem:[#allocation2 + $0x44] sm:$0xf]  ;;  %v3985_v17 = vld [vmem:[#allocation2 + $0x4d8] sm:$0xf0] }
  0x8f   :  { %1881 = vmatpush.bf16.msra.mxu2 %v4224_v27  ;;  %v3449_v27 = vld [vmem:[#allocation2 + $0xc0] sm:$0xf0] }
  0x90   :  { %1894 = vmatpush.bf16.msra.mxu3 %v4228_v31  ;;  %v4926_v31 = vld [vmem:[#allocation2 + $0x4c] sm:$0xf]  ;;  %v3452_v40 = vor.u32 %v4925_v26, %v3449_v27  ;;  %v3855_v26 = vld [vmem:[#allocation2 + $0x358] sm:$0xf] }
  0x91   :  { %v3460_v44 = vor.u32 %v4926_v31, %v3457_v32  ;;  %v5040_v27 = vld [vmem:[#allocation2 + $0x3d4] sm:$0xf0] }
  0x92   :  { %1856 = vmatpush.bf16.msra.mxu0 %v4088_v37  ;;  %1869 = vmatpush.bf16.msra.mxu1 %v4092_v38  ;;  %v4361_v37 = vld [vmem:[#allocation2 + $0x7d0] sm:$0xf0]  ;;  %v4367_v38 = vld [vmem:[#allocation2 + $0x758] sm:$0xf]  ;;  %v3856_v33 = vor.u32 %v5040_v27, %v3855_v26  ;;  %v4247_v26 = vld [vmem:[#allocation2 + $0x660] sm:$0xf] }
  0x93   :  { %1882 = vmatpush.bf16.msra.mxu2 %v4096_v39  ;;  %v5168_v39 = vld [vmem:[#allocation2 + $0x7d4] sm:$0xf0]  ;;  %v4364_v46 = vor.u32 %v5151_v35, %v4361_v37  ;;  %v5007_v35 = vld [vmem:[#allocation2 + $0x2cc] sm:$0xf0]  ;;  %v5137_v27 = vld [vmem:[#allocation2 + $0x6dc] sm:$0xf0] }
  0x94   :  { %1895 = vmatpush.bf16.msra.mxu3 %v4100_v43  ;;  %v4369_v43 = vld [vmem:[#allocation2 + $0x7d8] sm:$0xf0]  ;;  %v4368_v47 = vor.u32 %v5168_v39, %v4367_v38  ;;  %v3721_v39 = vld [vmem:[#allocation2 + $0x2d0] sm:$0xf0] }
  0x96   :  { %1857 = vmatpush.bf16.msra.mxu0 %v3960_v49  ;;  %1870 = vmatpush.bf16.msra.mxu1 %v3964_v50  ;;  %v5135_v49 = vld [vmem:[#allocation2 + $0x6cc] sm:$0xf0]  ;;  %v5119_v50 = vld [vmem:[#allocation2 + $0x654] sm:$0xf] }
  0x97   :  { %1883 = vmatpush.bf16.msra.mxu2 %v3968_v1  ;;  %v4372_v1 = vor.u32 %v5152_v42, %v4369_v43  ;;  %v4232_v56 = vor.u32 %v5135_v49, %v4231_v48  ;;  %v4236_v57 = vor.u32 %v5119_v50, %v4233_v51  ;;  %v4992_v42 = vld [vmem:[#allocation2 + $0x25c] sm:$0xf]  ;;  %v4975_v48 = vld [vmem:[#allocation2 + $0x1cc] sm:$0xf0]  ;;  %v4959_v49 = vld [vmem:[#allocation2 + $0x154] sm:$0xf] }
  0x98   :  { %1896 = vmatpush.bf16.msra.mxu3 %v3972_v54  ;;  %v5120_v54 = vld [vmem:[#allocation2 + $0x65c] sm:$0xf]  ;;  %v3593_v51 = vld [vmem:[#allocation2 + $0x1d0] sm:$0xf0] }
  0x99   :  { %v4244_v63 = vor.u32 %v5120_v54, %v4241_v55  ;;  %v3729_v43 = vld [vmem:[#allocation2 + $0x2d8] sm:$0xf0] }
  0x9a   :  { %1858 = vmatpush.bf16.msra.mxu0 %v3832_v60  ;;  %1871 = vmatpush.bf16.msra.mxu1 %v3836_v61  ;;  %v5103_v60 = vld [vmem:[#allocation2 + $0x5cc] sm:$0xf0]  ;;  %v5087_v61 = vld [vmem:[#allocation2 + $0x554] sm:$0xf]  ;;  %v4960_v55 = vld [vmem:[#allocation2 + $0x15c] sm:$0xf] }
  0x9b   :  { %1884 = vmatpush.bf16.msra.mxu2 %v3840_v62  ;;  %v5420_v62 = vld [vmem:[%s5928_s0] sm:$0xf]  ;;  %v4104_v6 = vor.u32 %v5103_v60, %v4103_v59  ;;  %v4108_v7 = vor.u32 %v5087_v61, %v4105_v0  ;;  %v4943_v59 = vld [vmem:[#allocation2 + $0xcc] sm:$0xf0]  ;;  %v3596_v61 = vor.u32 %v4959_v49, %v3593_v51  ;;  %v4927_v0 = vld [vmem:[#allocation2 + $0x54] sm:$0xf] }
  0x9c   :  { %1897 = vmatpush.bf16.msra.mxu3 %v3844_v3  ;;  %v5104_v3 = vld [vmem:[#allocation2 + $0x5d4] sm:$0xf0] }
  0x9d   :  { %v4112_v8 = vor.u32 %v5104_v3, %v4111_v2  ;;  %v3465_v2 = vld [vmem:[#allocation2 + $0xd0] sm:$0xf0]  ;;  %v3471_v3 = vld [vmem:[#allocation2 + $0x58] sm:$0xf] }
  0x9e   :  { %1859 = vmatpush.bf16.msra.mxu0 %v3704_v9  ;;  %1872 = vmatpush.bf16.msra.mxu1 %v3708_v10  ;;  %v3975_v9 = vld [vmem:[#allocation2 + $0x450] sm:$0xf] }
  0x9f   :  { %1885 = vmatpush.bf16.msra.mxu2 %v3712_v11  ;;  %v5071_v10 = vld [vmem:[#allocation2 + $0x4cc] sm:$0xf0]  ;;  %v5055_v11 = vld [vmem:[#allocation2 + $0x454] sm:$0xf] }
  0xa0   :  { %1898 = vmatpush.bf16.msra.mxu3 %v3716_v15  ;;  %v5072_v15 = vld [vmem:[#allocation2 + $0x4d4] sm:$0xf0]  ;;  %v3976_v18 = vor.u32 %v5071_v10, %v3975_v9  ;;  %v3980_v19 = vor.u32 %v5055_v11, %v3977_v13  ;;  %v4375_v9 = vld [vmem:[#allocation2 + $0x760] sm:$0xf]  ;;  %v5153_v11 = vld [vmem:[#allocation2 + $0x764] sm:$0xf] }
  0xa1   :  { %v3984_v20 = vor.u32 %v5072_v15, %v3983_v14  ;;  %v5169_v10 = vld [vmem:[#allocation2 + $0x7dc] sm:$0xf0]  ;;  %v4377_v13 = vld [vmem:[#allocation2 + $0x7e0] sm:$0xf0]  ;;  %v4383_v14 = vld [vmem:[#allocation2 + $0x768] sm:$0xf] }
  0xa2   :  { %1860 = vmatpush.bf16.msra.mxu0 %v3576_v21  ;;  %1873 = vmatpush.bf16.msra.mxu1 %v3580_v24  ;;  %v3847_v21 = vld [vmem:[#allocation2 + $0x350] sm:$0xf]  ;;  %v3988_v24 = vor.u32 %v5056_v16, %v3985_v17  ;;  %v5170_v15 = vld [vmem:[#allocation2 + $0x7e4] sm:$0xf0]  ;;  %v3468_v16 = vor.u32 %v4927_v0, %v3465_v2 }
  0xa3   :  { %1886 = vmatpush.bf16.msra.mxu2 %v3584_v25  ;;  %v3849_v25 = vld [vmem:[#allocation2 + $0x3d0] sm:$0xf0]  ;;  %v3848_v30 = vor.u32 %v5039_v22, %v3847_v21  ;;  %v4376_v22 = vor.u32 %v5169_v10, %v4375_v9  ;;  %v3871_v9 = vld [vmem:[#allocation2 + $0x368] sm:$0xf] }
  0xa4   :  { %1899 = vmatpush.bf16.msra.mxu3 %v3588_v29  ;;  %v3857_v29 = vld [vmem:[#allocation2 + $0x3d8] sm:$0xf0]  ;;  %v3852_v32 = vor.u32 %v5023_v23, %v3849_v25  ;;  %v4384_v25 = vor.u32 %v5170_v15, %v4383_v14  ;;  %v5042_v10 = vld [vmem:[#allocation2 + $0x3e4] sm:$0xf0] }
  0xa5   :  { %v3860_v38 = vor.u32 %v5024_v28, %v3857_v29  ;;  %v5121_v28 = vld [vmem:[#allocation2 + $0x664] sm:$0xf] }
  0xa6   :  { %1861 = vmatpush.bf16.msra.mxu0 %v3448_v36  ;;  %1874 = vmatpush.bf16.msra.mxu1 %v3452_v40  ;;  %v5426_v31 = vpop.f32.mrf.mxu0  ;;  %v4991_v36 = vld [vmem:[#allocation2 + $0x254] sm:$0xf]  ;;  %v5428_v37 = vpop.f32.mrf.mxu1  ;;  %v3727_v40 = vld [vmem:[#allocation2 + $0x258] sm:$0xf] }
  0xa7   :  { %1887 = vmatpush.bf16.msra.mxu2 %v3456_v41  ;;  %v5008_v41 = vld [vmem:[#allocation2 + $0x2d4] sm:$0xf0] }
  0xa8   :  { %1900 = vmatpush.bf16.msra.mxu3 %v3460_v44  ;;  %v3720_v44 = vor.u32 %v5007_v35, %v3719_v34  ;;  %v5122_v34 = vld [vmem:[#allocation2 + $0x66c] sm:$0xf] }
  0xa9   :  { %1862 = vmatmul.bf16.vlgmr.msra.gmra.mxu0 %v5420_v62  ;;  %1875 = vmatmul.bf16.vlgmr.msra.gmra.mxu1 %v5420_v62  ;;  %v4257_v35 = vld [vmem:[#allocation2 + $0x6e8] sm:$0xf0] }
  0xaa   :  { %1906 = vmatpush.bf16.msrb.mxu0 %v4360_v45  ;;  %1919 = vmatpush.bf16.msrb.mxu1 %v4364_v46  ;;  %v3724_v45 = vor.u32 %v4991_v36, %v3721_v39  ;;  %v3728_v46 = vor.u32 %v5008_v41, %v3727_v40  ;;  %v4248_v36 = vor.u32 %v5137_v27, %v4247_v26  ;;  %v4119_v40 = vld [vmem:[#allocation2 + $0x560] sm:$0xf]  ;;  %v4994_v26 = vld [vmem:[#allocation2 + $0x26c] sm:$0xf] }
  0xab   :  { %1932 = vmatpush.bf16.msrb.mxu2 %v4368_v47  ;;  %1901 = vmatmul.bf16.vlgmr.msra.gmra.mxu3 %v5420_v62  ;;  %v3591_v47 = vld [vmem:[#allocation2 + $0x150] sm:$0xf]  ;;  %v5105_v41 = vld [vmem:[#allocation2 + $0x5dc] sm:$0xf0]  ;;  %v3745_v27 = vld [vmem:[#allocation2 + $0x2e8] sm:$0xf0] }
  0xac   :  { %1945 = vmatpush.bf16.msrb.mxu3 %v4372_v1  ;;  %1888 = vmatmul.bf16.vlgmr.msra.gmra.mxu2 %v5420_v62  ;;  %v3732_v1 = vor.u32 %v4992_v42, %v3729_v43  ;;  %v5089_v42 = vld [vmem:[#allocation2 + $0x564] sm:$0xf]  ;;  %v4260_v43 = vor.u32 %v5122_v34, %v4257_v35  ;;  %v4120_v49 = vor.u32 %v5105_v41, %v4119_v40  ;;  %v4977_v34 = vld [vmem:[#allocation2 + $0x1dc] sm:$0xf0]  ;;  %v4978_v40 = vld [vmem:[#allocation2 + $0x1e4] sm:$0xf0] }
  0xad   :  { %v4961_v35 = vld [vmem:[#allocation2 + $0x164] sm:$0xf]  ;;  %v4962_v41 = vld [vmem:[#allocation2 + $0x16c] sm:$0xf] }
  0xae   :  { %1907 = vmatpush.bf16.msrb.mxu0 %v4232_v56  ;;  %1920 = vmatpush.bf16.msrb.mxu1 %v4236_v57  ;;  %v5432_v54 = vpop.f32.mrf.mxu3  ;;  %v3601_v56 = vld [vmem:[#allocation2 + $0x1d8] sm:$0xf0]  ;;  %v3592_v57 = vor.u32 %v4975_v48, %v3591_v47  ;;  %v1657_v60 = vpop.f32.mrf.mxu0  ;;  %v5090_v47 = vld [vmem:[#allocation2 + $0x56c] sm:$0xf] }
  0xaf   :  { %1933 = vmatpush.bf16.msrb.mxu2 %v4240_v58  ;;  %v5430_v50 = vpop.f32.mrf.mxu2  ;;  %v3463_v58 = vld [vmem:[#allocation2 + $0x50] sm:$0xf]  ;;  %v1670_v4 = vpop.f32.mrf.mxu1  ;;  %v3604_v5 = vor.u32 %v4960_v55, %v3601_v56  ;;  %v4129_v48 = vld [vmem:[#allocation2 + $0x5e8] sm:$0xf0]  ;;  %v5057_v55 = vld [vmem:[#allocation2 + $0x464] sm:$0xf] }
  0xb0   :  { %1946 = vmatpush.bf16.msrb.mxu3 %v4244_v63  ;;  %v3600_v63 = vor.u32 %v4976_v53, %v3599_v52  ;;  %v3991_v52 = vld [vmem:[#allocation2 + $0x460] sm:$0xf]  ;;  %v4132_v56 = vor.u32 %v5090_v47, %v4129_v48  ;;  %v5058_v60 = vld [vmem:[#allocation2 + $0x46c] sm:$0xf] }
  0xb1   :  { %v5073_v53 = vld [vmem:[#allocation2 + $0x4dc] sm:$0xf0] }
  0xb2   :  { %1908 = vmatpush.bf16.msrb.mxu0 %v4104_v6  ;;  %1921 = vmatpush.bf16.msrb.mxu1 %v4108_v7  ;;  %v4944_v6 = vld [vmem:[#allocation2 + $0xd4] sm:$0xf0]  ;;  %v4928_v7 = vld [vmem:[#allocation2 + $0x5c] sm:$0xf]  ;;  %v3863_v4 = vld [vmem:[#allocation2 + $0x360] sm:$0xf] }
  0xb3   :  { %1934 = vmatpush.bf16.msrb.mxu2 %v4112_v8  ;;  %v3473_v8 = vld [vmem:[#allocation2 + $0xd8] sm:$0xf0]  ;;  %v3472_v17 = vor.u32 %v4944_v6, %v3471_v3  ;;  %v5025_v6 = vld [vmem:[#allocation2 + $0x364] sm:$0xf] }
  0xb4   :  { %1947 = vmatpush.bf16.msrb.mxu3 %v4116_v12  ;;  %v3464_v12 = vor.u32 %v4943_v59, %v3463_v58  ;;  %v3476_v21 = vor.u32 %v4928_v7, %v3473_v8  ;;  %v3999_v58 = vld [vmem:[#allocation2 + $0x468] sm:$0xf]  ;;  %v3865_v8 = vld [vmem:[#allocation2 + $0x3e0] sm:$0xf0] }
  0xb5   :  { %v5074_v59 = vld [vmem:[#allocation2 + $0x4e4] sm:$0xf0]  ;;  %v3868_v15 = vor.u32 %v5025_v6, %v3865_v8  ;;  %v4401_v8 = vld [vmem:[#allocation2 + $0x7f8] sm:$0xf0] }
  0xb6   :  { %1909 = vmatpush.bf16.msrb.mxu0 %v3976_v18  ;;  %1922 = vmatpush.bf16.msrb.mxu1 %v3980_v19  ;;  %v5154_v18 = vld [vmem:[#allocation2 + $0x76c] sm:$0xf]  ;;  %v1696_v23 = vpop.f32.mrf.mxu3  ;;  %v4000_v3 = vor.u32 %v5074_v59, %v3999_v58  ;;  %v4391_v59 = vld [vmem:[#allocation2 + $0x770] sm:$0xf] }
  0xb7   :  { %1935 = vmatpush.bf16.msrb.mxu2 %v3984_v20  ;;  %v4385_v19 = vld [vmem:[#allocation2 + $0x7e8] sm:$0xf0]  ;;  %v1683_v20 = vpop.f32.mrf.mxu2  ;;  %v3743_v23 = vld [vmem:[#allocation2 + $0x268] sm:$0xf] }
  0xb8   :  { %1948 = vmatpush.bf16.msrb.mxu3 %v3988_v24  ;;  %v4380_v24 = vor.u32 %v5153_v11, %v4377_v13  ;;  %v4388_v29 = vor.u32 %v5154_v18, %v4385_v19  ;;  %v5026_v11 = vld [vmem:[#allocation2 + $0x36c] sm:$0xf]  ;;  %v5009_v18 = vld [vmem:[#allocation2 + $0x2dc] sm:$0xf0]  ;;  %v4993_v19 = vld [vmem:[#allocation2 + $0x264] sm:$0xf] }
  0xba   :  { %1910 = vmatpush.bf16.msrb.mxu0 %v3848_v30  ;;  %1923 = vmatpush.bf16.msrb.mxu1 %v3852_v32  ;;  %v4249_v30 = vld [vmem:[#allocation2 + $0x6e0] sm:$0xf0]  ;;  %v4255_v32 = vld [vmem:[#allocation2 + $0x668] sm:$0xf] }
  0xbb   :  { %1936 = vmatpush.bf16.msrb.mxu2 %v3856_v33  ;;  %v5138_v33 = vld [vmem:[#allocation2 + $0x6e4] sm:$0xf0] }
  0xbc   :  { %1949 = vmatpush.bf16.msrb.mxu3 %v3860_v38  ;;  %v4252_v38 = vor.u32 %v5121_v28, %v4249_v30  ;;  %v4256_v39 = vor.u32 %v5138_v33, %v4255_v32  ;;  %v3607_v33 = vld [vmem:[#allocation2 + $0x160] sm:$0xf] }
  0xbe   :  { %1911 = vmatpush.bf16.msrb.mxu0 %v3720_v44  ;;  %1924 = vmatpush.bf16.msrb.mxu1 %v3724_v45  ;;  %v4121_v44 = vld [vmem:[#allocation2 + $0x5e0] sm:$0xf0]  ;;  %v4127_v45 = vld [vmem:[#allocation2 + $0x568] sm:$0xf] }
  0xbf   :  { %1937 = vmatpush.bf16.msrb.mxu2 %v3728_v46  ;;  %v5106_v46 = vld [vmem:[#allocation2 + $0x5e4] sm:$0xf0] }
  0xc0   :  { %1950 = vmatpush.bf16.msrb.mxu3 %v3732_v1  ;;  %v4124_v1 = vor.u32 %v5089_v42, %v4121_v44  ;;  %v4128_v51 = vor.u32 %v5106_v46, %v4127_v45  ;;  %v3617_v42 = vld [vmem:[#allocation2 + $0x1e8] sm:$0xf0]  ;;  %v3479_v44 = vld [vmem:[#allocation2 + $0x60] sm:$0xf] }
  0xc1   :  { %v4945_v45 = vld [vmem:[#allocation2 + $0xdc] sm:$0xf0] }
  0xc2   :  { %1912 = vmatpush.bf16.msrb.mxu0 %v3592_v57  ;;  %1925 = vmatpush.bf16.msrb.mxu1 %v3596_v61  ;;  %v3993_v57 = vld [vmem:[#allocation2 + $0x4e0] sm:$0xf0]  ;;  %v4001_v61 = vld [vmem:[#allocation2 + $0x4e8] sm:$0xf0] }
  0xc3   :  { %1938 = vmatpush.bf16.msrb.mxu2 %v3600_v63  ;;  %v3992_v63 = vor.u32 %v5073_v53, %v3991_v52  ;;  %v3996_v2 = vor.u32 %v5057_v55, %v3993_v57  ;;  %v4004_v7 = vor.u32 %v5058_v60, %v4001_v61  ;;  %v3620_v53 = vor.u32 %v4962_v41, %v3617_v42  ;;  %v4946_v55 = vld [vmem:[#allocation2 + $0xe4] sm:$0xf0]  ;;  %v3489_v57 = vld [vmem:[#allocation2 + $0xe8] sm:$0xf0]  ;;  %v5171_v60 = vld [vmem:[#allocation2 + $0x7ec] sm:$0xf0] }
  0xc4   :  { %1951 = vmatpush.bf16.msrb.mxu3 %v3604_v5  ;;  %v5041_v5 = vld [vmem:[#allocation2 + $0x3dc] sm:$0xf0]  ;;  %v5155_v61 = vld [vmem:[#allocation2 + $0x774] sm:$0xf]  ;;  %v4007_v42 = vld [vmem:[#allocation2 + $0x470] sm:$0xf] }
  0xc5   :  { %v3864_v13 = vor.u32 %v5041_v5, %v3863_v4  ;;  %v5172_v4 = vld [vmem:[#allocation2 + $0x7f4] sm:$0xf0] }
  0xc6   :  { %1913 = vmatpush.bf16.msrb.mxu0 %v3464_v12  ;;  %1926 = vmatpush.bf16.msrb.mxu1 %v3468_v16  ;;  %v5438_v0 = vpop.f32.mrf.mxu0  ;;  %v3873_v12 = vld [vmem:[#allocation2 + $0x3e8] sm:$0xf0]  ;;  %v5440_v14 = vpop.f32.mrf.mxu1  ;;  %v3872_v16 = vor.u32 %v5042_v10, %v3871_v9  ;;  %v4392_v10 = vor.u32 %v5171_v60, %v4391_v59 }
  0xc7   :  { %1939 = vmatpush.bf16.msrb.mxu2 %v3472_v17  ;;  %v3735_v17 = vld [vmem:[#allocation2 + $0x260] sm:$0xf] }
  0xc8   :  { %1952 = vmatpush.bf16.msrb.mxu3 %v3476_v21  ;;  %v3876_v21 = vor.u32 %v5026_v11, %v3873_v12  ;;  %v3736_v28 = vor.u32 %v5009_v18, %v3735_v17  ;;  %v4265_v18 = vld [vmem:[#allocation2 + $0x6f0] sm:$0xf0] }
  0xc9   :  { %1914 = vmatmul.bf16.vlgmr.msrb.gmra.mxu0 %v5420_v62  ;;  %1927 = vmatmul.bf16.vlgmr.msrb.gmra.mxu1 %v5420_v62 }
  0xca   :  { %1958 = vmatpush.bf16.msra.mxu0 %v4376_v22  ;;  %1971 = vmatpush.bf16.msra.mxu1 %v4380_v24  ;;  %v3737_v22 = vld [vmem:[#allocation2 + $0x2e0] sm:$0xf0]  ;;  %v5010_v24 = vld [vmem:[#allocation2 + $0x2e4] sm:$0xf0] }
  0xcb   :  { %1984 = vmatpush.bf16.msra.mxu2 %v4384_v25  ;;  %1953 = vmatmul.bf16.vlgmr.msrb.gmra.mxu3 %v5420_v62  ;;  %v3740_v30 = vor.u32 %v4993_v19, %v3737_v22  ;;  %v3744_v32 = vor.u32 %v5010_v24, %v3743_v23  ;;  %v4271_v19 = vld [vmem:[#allocation2 + $0x678] sm:$0xf]  ;;  %v5124_v22 = vld [vmem:[#allocation2 + $0x67c] sm:$0xf] }
  0xcc   :  { %1997 = vmatpush.bf16.msra.mxu3 %v4388_v29  ;;  %1940 = vmatmul.bf16.vlgmr.msrb.gmra.mxu2 %v5420_v62  ;;  %v4273_v23 = vld [vmem:[#allocation2 + $0x6f8] sm:$0xf0] }
  0xce   :  { %1959 = vmatpush.bf16.msra.mxu0 %v4248_v36  ;;  %1972 = vmatpush.bf16.msra.mxu1 %v4252_v38  ;;  %v5444_v25 = vpop.f32.mrf.mxu3  ;;  %v1709_v29 = vpop.f32.mrf.mxu0  ;;  %v3748_v36 = vor.u32 %v4994_v26, %v3745_v27  ;;  %v3609_v38 = vld [vmem:[#allocation2 + $0x1e0] sm:$0xf0] }
  0xcf   :  { %1985 = vmatpush.bf16.msra.mxu2 %v4256_v39  ;;  %v5442_v20 = vpop.f32.mrf.mxu2  ;;  %v3615_v39 = vld [vmem:[#allocation2 + $0x168] sm:$0xf]  ;;  %v1722_v46 = vpop.f32.mrf.mxu1  ;;  %v3612_v47 = vor.u32 %v4961_v35, %v3609_v38  ;;  %v5107_v29 = vld [vmem:[#allocation2 + $0x5ec] sm:$0xf0]  ;;  %v5108_v35 = vld [vmem:[#allocation2 + $0x5f4] sm:$0xf0] }
  0xd0   :  { %1998 = vmatpush.bf16.msra.mxu3 %v4260_v43  ;;  %v3608_v43 = vor.u32 %v4977_v34, %v3607_v33  ;;  %v3616_v48 = vor.u32 %v4978_v40, %v3615_v39  ;;  %v4137_v33 = vld [vmem:[#allocation2 + $0x5f0] sm:$0xf0]  ;;  %v4143_v34 = vld [vmem:[#allocation2 + $0x578] sm:$0xf]  ;;  %v4145_v38 = vld [vmem:[#allocation2 + $0x5f8] sm:$0xf0] }
  0xd1   :  { %v4144_v41 = vor.u32 %v5108_v35, %v4143_v34  ;;  %v4009_v46 = vld [vmem:[#allocation2 + $0x4f0] sm:$0xf0]  ;;  %v4980_v34 = vld [vmem:[#allocation2 + $0x1f4] sm:$0xf0]  ;;  %v4964_v35 = vld [vmem:[#allocation2 + $0x17c] sm:$0xf] }
  0xd2   :  { %1960 = vmatpush.bf16.msra.mxu0 %v4120_v49  ;;  %1973 = vmatpush.bf16.msra.mxu1 %v4124_v1  ;;  %v4929_v49 = vld [vmem:[#allocation2 + $0x64] sm:$0xf] }
  0xd3   :  { %1986 = vmatpush.bf16.msra.mxu2 %v4128_v51  ;;  %v3481_v1 = vld [vmem:[#allocation2 + $0xe0] sm:$0xf0]  ;;  %v3487_v51 = vld [vmem:[#allocation2 + $0x68] sm:$0xf] }
  0xd4   :  { %1999 = vmatpush.bf16.msra.mxu3 %v4132_v56  ;;  %v4930_v56 = vld [vmem:[#allocation2 + $0x6c] sm:$0xf]  ;;  %v3484_v5 = vor.u32 %v4929_v49, %v3481_v1  ;;  %v3488_v6 = vor.u32 %v4946_v55, %v3487_v51  ;;  %v5060_v49 = vld [vmem:[#allocation2 + $0x47c] sm:$0xf] }
  0xd5   :  { %v3492_v9 = vor.u32 %v4930_v56, %v3489_v57  ;;  %v4017_v1 = vld [vmem:[#allocation2 + $0x4f8] sm:$0xf0]  ;;  %v3879_v56 = vld [vmem:[#allocation2 + $0x370] sm:$0xf] }
  0xd6   :  { %1961 = vmatpush.bf16.msra.mxu0 %v3992_v63  ;;  %1974 = vmatpush.bf16.msra.mxu1 %v3996_v2  ;;  %v1748_v58 = vpop.f32.mrf.mxu3  ;;  %v3480_v63 = vor.u32 %v4945_v45, %v3479_v44  ;;  %v4393_v2 = vld [vmem:[#allocation2 + $0x7f0] sm:$0xf0]  ;;  %v5043_v57 = vld [vmem:[#allocation2 + $0x3ec] sm:$0xf0]  ;;  %v4020_v60 = vor.u32 %v5060_v49, %v4017_v1  ;;  %v4932_v1 = vld [vmem:[#allocation2 + $0x7c] sm:$0xf] }
  0xd7   :  { %1987 = vmatpush.bf16.msra.mxu2 %v4000_v3  ;;  %v1735_v52 = vpop.f32.mrf.mxu2  ;;  %v4399_v3 = vld [vmem:[#allocation2 + $0x778] sm:$0xf]  ;;  %v4396_v11 = vor.u32 %v5155_v61, %v4393_v2  ;;  %v5059_v44 = vld [vmem:[#allocation2 + $0x474] sm:$0xf] }
  0xd8   :  { %2000 = vmatpush.bf16.msra.mxu3 %v4004_v7  ;;  %v5156_v7 = vld [vmem:[#allocation2 + $0x77c] sm:$0xf]  ;;  %v4400_v12 = vor.u32 %v5172_v4, %v4399_v3  ;;  %v5027_v58 = vld [vmem:[#allocation2 + $0x374] sm:$0xf]  ;;  %v5044_v2 = vld [vmem:[#allocation2 + $0x3f4] sm:$0xf0] }
  0xd9   :  { %v4404_v17 = vor.u32 %v5156_v7, %v4401_v8  ;;  %v3881_v61 = vld [vmem:[#allocation2 + $0x3f0] sm:$0xf0]  ;;  %v5028_v3 = vld [vmem:[#allocation2 + $0x37c] sm:$0xf]  ;;  %v3751_v8 = vld [vmem:[#allocation2 + $0x270] sm:$0xf] }
  0xda   :  { %1962 = vmatpush.bf16.msra.mxu0 %v3864_v13  ;;  %1975 = vmatpush.bf16.msra.mxu1 %v3868_v15  ;;  %v4263_v13 = vld [vmem:[#allocation2 + $0x670] sm:$0xf]  ;;  %v3889_v4 = vld [vmem:[#allocation2 + $0x3f8] sm:$0xf0] }
  0xdb   :  { %1988 = vmatpush.bf16.msra.mxu2 %v3872_v16  ;;  %v5139_v15 = vld [vmem:[#allocation2 + $0x6ec] sm:$0xf0]  ;;  %v5123_v16 = vld [vmem:[#allocation2 + $0x674] sm:$0xf] }
  0xdc   :  { %2001 = vmatpush.bf16.msra.mxu3 %v3876_v21  ;;  %v5140_v21 = vld [vmem:[#allocation2 + $0x6f4] sm:$0xf0]  ;;  %v4264_v24 = vor.u32 %v5139_v15, %v4263_v13  ;;  %v4268_v26 = vor.u32 %v5123_v16, %v4265_v18  ;;  %v3753_v13 = vld [vmem:[#allocation2 + $0x2f0] sm:$0xf0]  ;;  %v4996_v18 = vld [vmem:[#allocation2 + $0x27c] sm:$0xf] }
  0xdd   :  { %v4272_v27 = vor.u32 %v5140_v21, %v4271_v19  ;;  %v3759_v15 = vld [vmem:[#allocation2 + $0x278] sm:$0xf]  ;;  %v3761_v19 = vld [vmem:[#allocation2 + $0x2f8] sm:$0xf0] }
  0xde   :  { %1963 = vmatpush.bf16.msra.mxu0 %v3736_v28  ;;  %1976 = vmatpush.bf16.msra.mxu1 %v3740_v30  ;;  %v4135_v28 = vld [vmem:[#allocation2 + $0x570] sm:$0xf]  ;;  %v5091_v30 = vld [vmem:[#allocation2 + $0x574] sm:$0xf]  ;;  %v5012_v16 = vld [vmem:[#allocation2 + $0x2f4] sm:$0xf0] }
  0xdf   :  { %1989 = vmatpush.bf16.msra.mxu2 %v3744_v32  ;;  %v4276_v32 = vor.u32 %v5124_v22, %v4273_v23  ;;  %v4136_v39 = vor.u32 %v5107_v29, %v4135_v28  ;;  %v4140_v40 = vor.u32 %v5091_v30, %v4137_v33  ;;  %v4963_v28 = vld [vmem:[#allocation2 + $0x174] sm:$0xf]  ;;  %v3764_v30 = vor.u32 %v4996_v18, %v3761_v19  ;;  %v3631_v33 = vld [vmem:[#allocation2 + $0x178] sm:$0xf]  ;;  %v5201_v18 = vld [vmem:[%s5931_s3 + $0xe0] sm:$0xff] }
  0xe0   :  { %2002 = vmatpush.bf16.msra.mxu3 %v3748_v36  ;;  %v5092_v36 = vld [vmem:[#allocation2 + $0x57c] sm:$0xf] }
  0xe1   :  { %v4148_v45 = vor.u32 %v5092_v36, %v4145_v38  ;;  %v3633_v36 = vld [vmem:[#allocation2 + $0x1f8] sm:$0xf0] }
  0xe2   :  { %1964 = vmatpush.bf16.msra.mxu0 %v3608_v43  ;;  %1977 = vmatpush.bf16.msra.mxu1 %v3612_v47  ;;  %v5075_v43 = vld [vmem:[#allocation2 + $0x4ec] sm:$0xf0]  ;;  %v4015_v47 = vld [vmem:[#allocation2 + $0x478] sm:$0xf] }
  0xe3   :  { %1990 = vmatpush.bf16.msra.mxu2 %v3616_v48  ;;  %v5076_v48 = vld [vmem:[#allocation2 + $0x4f4] sm:$0xf0]  ;;  %v4008_v51 = vor.u32 %v5075_v43, %v4007_v42  ;;  %v4947_v42 = vld [vmem:[#allocation2 + $0xec] sm:$0xf0]  ;;  %v4931_v43 = vld [vmem:[#allocation2 + $0x74] sm:$0xf] }
  0xe4   :  { %2003 = vmatpush.bf16.msra.mxu3 %v3620_v53  ;;  %v4012_v53 = vor.u32 %v5059_v44, %v4009_v46  ;;  %v4016_v55 = vor.u32 %v5076_v48, %v4015_v47  ;;  %v3497_v46 = vld [vmem:[#allocation2 + $0xf0] sm:$0xf0]  ;;  %v3503_v47 = vld [vmem:[#allocation2 + $0x78] sm:$0xf] }
  0xe5   :  { %v4948_v48 = vld [vmem:[#allocation2 + $0xf4] sm:$0xf0] }
  0xe6   :  { %1965 = vmatpush.bf16.msra.mxu0 %v3480_v63  ;;  %1978 = vmatpush.bf16.msra.mxu1 %v3484_v5  ;;  %v5450_v52 = vpop.f32.mrf.mxu0  ;;  %v5452_v59 = vpop.f32.mrf.mxu1  ;;  %v3887_v63 = vld [vmem:[#allocation2 + $0x378] sm:$0xf]  ;;  %v3880_v5 = vor.u32 %v5043_v57, %v3879_v56  ;;  %v3504_v56 = vor.u32 %v4948_v48, %v3503_v47  ;;  %v5211_v47 = vld [vmem:[%s5931_s3 + $0x130] sm:$0xff] }
  0xe7   :  { %1991 = vmatpush.bf16.msra.mxu2 %v3488_v6  ;;  %v3884_v6 = vor.u32 %v5027_v58, %v3881_v61  ;;  %v3888_v7 = vor.u32 %v5044_v2, %v3887_v63  ;;  %v5180_v58 = vld [vmem:[%s5931_s3 + $0x38] sm:$0xff]  ;;  %v5179_v63 = vld [vmem:[%s5931_s3 + $0x30] sm:$0xff] }
  0xe8   :  { %2004 = vmatpush.bf16.msra.mxu3 %v3492_v9  ;;  %v5011_v9 = vld [vmem:[#allocation2 + $0x2ec] sm:$0xf0]  ;;  %v5196_v61 = vld [vmem:[%s5931_s3 + $0xb8] sm:$0xff] }
  0xe9   :  { %1966 = vmatmul.bf16.vlgmr.msra.gmra.mxu0 %v5420_v62  ;;  %1979 = vmatmul.bf16.vlgmr.msra.gmra.mxu1 %v5420_v62  ;;  %v3752_v21 = vor.u32 %v5011_v9, %v3751_v8  ;;  %v5204_v2 = vld [vmem:[%s5931_s3 + $0xf8] sm:$0xff]  ;;  %v5194_v8 = vld [vmem:[%s5931_s3 + $0xa8] sm:$0xff] }
  0xea   :  { %2010 = vmatpush.bf16.msrb.mxu0 %v4392_v10  ;;  %2023 = vmatpush.bf16.msrb.mxu1 %v4396_v11  ;;  %v4995_v10 = vld [vmem:[#allocation2 + $0x274] sm:$0xf]  ;;  %v5184_v19 = vld [vmem:[%s5931_s3 + $0x58] sm:$0xff] }
  0xeb   :  { %2036 = vmatpush.bf16.msrb.mxu2 %v4400_v12  ;;  %2005 = vmatmul.bf16.vlgmr.msra.gmra.mxu3 %v5420_v62  ;;  %v3892_v12 = vor.u32 %v5028_v3, %v3889_v4  ;;  %v3756_v23 = vor.u32 %v4995_v10, %v3753_v13  ;;  %v5187_v3 = vld [vmem:[%s5931_s3 + $0x70] sm:$0xff]  ;;  %v5177_v10 = vld [vmem:[%s5931_s3 + $0x20] sm:$0xff]  ;;  %v5236_v48 = vld [vmem:[%s5931_s3 + $0x1f8] sm:$0xff] }
  0xec   :  { %2049 = vmatpush.bf16.msrb.mxu3 %v4404_v17  ;;  %1992 = vmatmul.bf16.vlgmr.msra.gmra.mxu2 %v5420_v62  ;;  %v5195_v4 = vld [vmem:[%s5931_s3 + $0xb0] sm:$0xff]  ;;  %v5185_v13 = vld [vmem:[%s5931_s3 + $0x60] sm:$0xff] }
  0xee   :  { %2011 = vmatpush.bf16.msrb.mxu0 %v4264_v24  ;;  %2024 = vmatpush.bf16.msrb.mxu1 %v4268_v26  ;;  %v5456_v17 = vpop.f32.mrf.mxu3  ;;  %v1761_v22 = vpop.f32.mrf.mxu0  ;;  %v3760_v24 = vor.u32 %v5012_v16, %v3759_v15  ;;  %v3623_v26 = vld [vmem:[#allocation2 + $0x170] sm:$0xf]  ;;  %v5193_v15 = vld [vmem:[%s5931_s3 + $0xa0] sm:$0xff]  ;;  %v5176_v16 = vld [vmem:[%s5931_s3 + $0x18] sm:$0xff] }
  0xef   :  { %2037 = vmatpush.bf16.msrb.mxu2 %v4272_v27  ;;  %v5454_v11 = vpop.f32.mrf.mxu2  ;;  %v4979_v27 = vld [vmem:[#allocation2 + $0x1ec] sm:$0xf0]  ;;  %v1774_v29 = vpop.f32.mrf.mxu1 }
  0xf0   :  { %2050 = vmatpush.bf16.msrb.mxu3 %v4276_v32  ;;  %v3625_v32 = vld [vmem:[#allocation2 + $0x1f0] sm:$0xf0]  ;;  %v3624_v38 = vor.u32 %v4979_v27, %v3623_v26 }
  0xf1   :  { %v5175_v27 = vld [vmem:[%s5931_s3 + $0x10] sm:$0xff] }
  0xf2   :  { %2012 = vmatpush.bf16.msrb.mxu0 %v4136_v39  ;;  %2025 = vmatpush.bf16.msrb.mxu1 %v4140_v40  ;;  %v3628_v39 = vor.u32 %v4963_v28, %v3625_v32  ;;  %v3632_v40 = vor.u32 %v4980_v34, %v3631_v33  ;;  %v5200_v28 = vld [vmem:[%s5931_s3 + $0xd8] sm:$0xff]  ;;  %v5183_v29 = vld [vmem:[%s5931_s3 + $0x50] sm:$0xff]  ;;  %v5174_v32 = vld [vmem:[%s5931_s3 + $0x8] sm:$0xff] }
  0xf3   :  { %2038 = vmatpush.bf16.msrb.mxu2 %v4144_v41  ;;  %v3495_v41 = vld [vmem:[#allocation2 + $0x70] sm:$0xf]  ;;  %v5182_v34 = vld [vmem:[%s5931_s3 + $0x48] sm:$0xff] }
  0xf4   :  { %2051 = vmatpush.bf16.msrb.mxu3 %v4148_v45  ;;  %v3636_v45 = vor.u32 %v4964_v35, %v3633_v36  ;;  %v5199_v33 = vld [vmem:[%s5931_s3 + $0xd0] sm:$0xff] }
  0xf6   :  { %2013 = vmatpush.bf16.msrb.mxu0 %v4008_v51  ;;  %2026 = vmatpush.bf16.msrb.mxu1 %v4012_v53  ;;  %v1800_v49 = vpop.f32.mrf.mxu3  ;;  %v3505_v51 = vld [vmem:[#allocation2 + $0xf8] sm:$0xf0]  ;;  %v3496_v53 = vor.u32 %v4947_v42, %v3495_v41  ;;  %v5181_v41 = vld [vmem:[%s5931_s3 + $0x40] sm:$0xff] }
  0xf7   :  { %2039 = vmatpush.bf16.msrb.mxu2 %v4016_v55  ;;  %v1787_v44 = vpop.f32.mrf.mxu2  ;;  %v3500_v55 = vor.u32 %v4931_v43, %v3497_v46  ;;  %v3508_v57 = vor.u32 %v4932_v1, %v3505_v51  ;;  %v5212_v42 = vld [vmem:[%s5931_s3 + $0x138] sm:$0xff]  ;;  %v5219_v49 = vld [vmem:[%s5931_s3 + $0x170] sm:$0xff]  ;;  %v5587_v1 = vld [vmem:[%s5930_s2] sm:$0xff] }
  0xf8   :  { %2052 = vmatpush.bf16.msrb.mxu3 %v4020_v60  ;;  %v5188_v60 = vld [vmem:[%s5931_s3 + $0x78] sm:$0xff]  ;;  %v5189_v44 = vld [vmem:[%s5931_s3 + $0x80] sm:$0xff]  ;;  %v5592_v51 = vld [vmem:[%s5930_s2 + $0x10] sm:$0xff] }
  0xf9   :  { %v5220_v43 = vld [vmem:[%s5931_s3 + $0x178] sm:$0xff] }
  0xfa   :  { %2014 = vmatpush.bf16.msrb.mxu0 %v3880_v5  ;;  %2027 = vmatpush.bf16.msrb.mxu1 %v3884_v6  ;;  %v5178_v5 = vld [vmem:[%s5931_s3 + $0x28] sm:$0xff]  ;;  %v5203_v6 = vld [vmem:[%s5931_s3 + $0xf0] sm:$0xff]  ;;  %v5228_v46 = vld [vmem:[%s5931_s3 + $0x1b8] sm:$0xff] }
  0xfb   :  { %2040 = vmatpush.bf16.msrb.mxu2 %v3888_v7 }
  0xfc   :  { %2053 = vmatpush.bf16.msrb.mxu3 %v3892_v12  ;;  %v5202_v12 = vld [vmem:[%s5931_s3 + $0xe8] sm:$0xff] }
  0xfe   :  { %2015 = vmatpush.bf16.msrb.mxu0 %v3752_v21  ;;  %2028 = vmatpush.bf16.msrb.mxu1 %v3756_v23 }
  0xff   :  { %2041 = vmatpush.bf16.msrb.mxu2 %v3760_v24  ;;  %v5192_v24 = vld [vmem:[%s5931_s3 + $0x98] sm:$0xff] }
 0x100   :  { %2054 = vmatpush.bf16.msrb.mxu3 %v3764_v30  ;;  %v5191_v30 = vld [vmem:[%s5931_s3 + $0x90] sm:$0xff] }
 0x102   :  { %2016 = vmatpush.bf16.msrb.mxu0 %v3624_v38  ;;  %2029 = vmatpush.bf16.msrb.mxu1 %v3628_v39  ;;  %v5190_v38 = vld [vmem:[%s5931_s3 + $0x88] sm:$0xff]  ;;  %v5173_v39 = vld [vmem:[%s5931_s3] sm:$0xff] }
 0x103   :  { %2042 = vmatpush.bf16.msrb.mxu2 %v3632_v40  ;;  %v5198_v40 = vld [vmem:[%s5931_s3 + $0xc8] sm:$0xff] }
 0x104   :  { %2055 = vmatpush.bf16.msrb.mxu3 %v3636_v45  ;;  %v5197_v45 = vld [vmem:[%s5931_s3 + $0xc0] sm:$0xff] }
 0x106   :  { %2017 = vmatpush.bf16.msrb.mxu0 %v3496_v53  ;;  %2030 = vmatpush.bf16.msrb.mxu1 %v3500_v55  ;;  %v5492_v7 = vpop.f32.mrf.mxu0  ;;  %v5497_v9 = vpop.f32.mrf.mxu1  ;;  %v302_v53 = vperm.slane %v5587_v1, 0  ;;  %v5227_v55 = vld [vmem:[%s5931_s3 + $0x1b0] sm:$0xff] }
 0x107   :  { %2043 = vmatpush.bf16.msrb.mxu2 %v3504_v56  ;;  %v303_v56 = vperm.slane %v5587_v1, 1 }
 0x108   :  { %2056 = vmatpush.bf16.msrb.mxu3 %v3508_v57  ;;  %v5210_v57 = vld [vmem:[%s5931_s3 + $0x128] sm:$0xff] }
 0x109   :  { %2018 = vmatmul.bf16.vlgmr.msrb.gmra.mxu0 %v5420_v62  ;;  %2031 = vmatmul.bf16.vlgmr.msrb.gmra.mxu1 %v5420_v62 }
 0x10a   :  { %3154 = vmatpush.bf16.msra.mxu0 %v5180_v58  ;;  %3167 = vmatpush.bf16.msra.mxu1 %v5188_v60  ;;  %v5235_v58 = vld [vmem:[%s5931_s3 + $0x1f0] sm:$0xff]  ;;  %v318_v60 = vperm.slane %v5592_v51, 0 }
 0x10b   :  { %2044 = vmatmul.bf16.vlgmr.msrb.gmra.mxu2 %v5420_v62  ;;  %2057 = vmatmul.bf16.vlgmr.msrb.gmra.mxu3 %v5420_v62  ;;  %v5186_v62 = vld [vmem:[%s5931_s3 + $0x68] sm:$0xff] }
 0x10c   :  { %3180 = vmatpush.bf16.msra.mxu2 %v5196_v61  ;;  %3193 = vmatpush.bf16.msra.mxu3 %v5204_v2  ;;  %v5218_v61 = vld [vmem:[%s5931_s3 + $0x168] sm:$0xff]  ;;  %v1656_v2 = vadd.f32 %v5426_v31, %v302_v53  ;;  %v5223_v53 = vld [vmem:[%s5931_s3 + $0x190] sm:$0xff] }
 0x10e   :  { %3155 = vmatpush.bf16.msra.mxu0 %v5179_v63  ;;  %3168 = vmatpush.bf16.msra.mxu1 %v5187_v3  ;;  %v5522_v22 = vpop.f32.mrf.mxu3  ;;  %v1813_v23 = vpop.f32.mrf.mxu0  ;;  %v319_v63 = vperm.slane %v5592_v51, 1  ;;  %v5226_v3 = vld [vmem:[%s5931_s3 + $0x1a8] sm:$0xff] }
 0x10f   :  { %v5520_v21 = vpop.f32.mrf.mxu2  ;;  %v1826_v26 = vpop.f32.mrf.mxu1 }
 0x110   :  { %3181 = vmatpush.bf16.msra.mxu2 %v5195_v4  ;;  %3194 = vmatpush.bf16.msra.mxu3 %v5203_v6  ;;  %v1669_v4 = vadd.f32 %v5428_v37, %v303_v56  ;;  %v5209_v6 = vld [vmem:[%s5931_s3 + $0x120] sm:$0xff]  ;;  %v304_v37 = vperm.slane %v5587_v1, 2  ;;  %v5208_v26 = vld [vmem:[%s5931_s3 + $0x118] sm:$0xff]  ;;  %v5206_v56 = vld [vmem:[%s5931_s3 + $0x108] sm:$0xff] }
 0x112   :  { %3156 = vmatpush.bf16.msra.mxu0 %v5178_v5  ;;  %3169 = vmatpush.bf16.msra.mxu1 %v5186_v62  ;;  %v5234_v62 = vld [vmem:[%s5931_s3 + $0x1e8] sm:$0xff] }
 0x114   :  { %3182 = vmatpush.bf16.msra.mxu2 %v5194_v8  ;;  %3195 = vmatpush.bf16.msra.mxu3 %v5202_v12 }
 0x116   :  { %3157 = vmatpush.bf16.msra.mxu0 %v5177_v10  ;;  %3170 = vmatpush.bf16.msra.mxu1 %v5185_v13  ;;  %v1852_v36 = vpop.f32.mrf.mxu3  ;;  %v5217_v10 = vld [vmem:[%s5931_s3 + $0x160] sm:$0xff]  ;;  %v305_v13 = vperm.slane %v5587_v1, 3 }
 0x117   :  { %v1839_v35 = vpop.f32.mrf.mxu2 }
 0x118   :  { %3183 = vmatpush.bf16.msra.mxu2 %v5193_v15  ;;  %3196 = vmatpush.bf16.msra.mxu3 %v5201_v18  ;;  %v2062_v15 = vmax.f32 %v1656_v2, 0.0  ;;  %v5225_v18 = vld [vmem:[%s5931_s3 + $0x1a0] sm:$0xff] }
 0x11a   :  { %3158 = vmatpush.bf16.msra.mxu0 %v5176_v16  ;;  %3171 = vmatpush.bf16.msra.mxu1 %v5184_v19  ;;  %v2063_v19 = vmax.f32 %v1669_v4, 0.0 }
 0x11c   :  { %3184 = vmatpush.bf16.msra.mxu2 %v5192_v24  ;;  %3197 = vmatpush.bf16.msra.mxu3 %v5200_v28  ;;  %v320_v24 = vperm.slane %v5592_v51, 2 }
 0x11e   :  { %3159 = vmatpush.bf16.msra.mxu0 %v5175_v27  ;;  %3172 = vmatpush.bf16.msra.mxu1 %v5183_v29  ;;  %v5233_v27 = vld [vmem:[%s5931_s3 + $0x1e0] sm:$0xff]  ;;  %v321_v29 = vperm.slane %v5592_v51, 3 }
 0x120   :  { %3185 = vmatpush.bf16.msra.mxu2 %v5191_v30  ;;  %3198 = vmatpush.bf16.msra.mxu3 %v5199_v33  ;;  %v5216_v30 = vld [vmem:[%s5931_s3 + $0x158] sm:$0xff] }
 0x122   :  { %3160 = vmatpush.bf16.msra.mxu0 %v5174_v32  ;;  %3173 = vmatpush.bf16.msra.mxu1 %v5182_v34  ;;  %v1682_v32 = vadd.f32 %v5430_v50, %v304_v37  ;;  %v1695_v34 = vadd.f32 %v5432_v54, %v305_v13  ;;  %v5207_v50 = vld [vmem:[%s5931_s3 + $0x110] sm:$0xff]  ;;  %v5232_v54 = vld [vmem:[%s5931_s3 + $0x1d8] sm:$0xff] }
 0x123   :  { %v5260_v37 = vld [vmem:[%s5931_s3 + $0x2b8] sm:$0xff]  ;;  %v5251_v13 = vld [vmem:[%s5931_s3 + $0x270] sm:$0xff] }
 0x124   :  { %3186 = vmatpush.bf16.msra.mxu2 %v5190_v38  ;;  %3199 = vmatpush.bf16.msra.mxu3 %v5198_v40  ;;  %v5224_v38 = vld [vmem:[%s5931_s3 + $0x198] sm:$0xff] }
 0x126   :  { %3161 = vmatpush.bf16.msra.mxu0 %v5173_v39  ;;  %3174 = vmatpush.bf16.msra.mxu1 %v5181_v41  ;;  %v1863_v5 = vpop.f32.mrf.mxu0  ;;  %v1876_v31 = vpop.f32.mrf.mxu1 }
 0x127   :  { %v1864_v8 = vadd.f32 %v1863_v5, %v318_v60  ;;  %v1877_v12 = vadd.f32 %v1876_v31, %v319_v63  ;;  %v5205_v5 = vld [vmem:[%s5931_s3 + $0x100] sm:$0xff]  ;;  %v5230_v31 = vld [vmem:[%s5931_s3 + $0x1c8] sm:$0xff] }
 0x128   :  { %3187 = vmatpush.bf16.msra.mxu2 %v5189_v44  ;;  %3200 = vmatpush.bf16.msra.mxu3 %v5197_v45  ;;  %v5215_v45 = vld [vmem:[%s5931_s3 + $0x150] sm:$0xff] }
 0x129   :  { %v2078_v16 = vmax.f32 %v1864_v8, 0.0  ;;  %v2079_v23 = vmax.f32 %v1877_v12, 0.0  ;;  %v5252_v8 = vld [vmem:[%s5931_s3 + $0x278] sm:$0xff]  ;;  %v5243_v12 = vld [vmem:[%s5931_s3 + $0x230] sm:$0xff] }
 0x12a   :  { %3206 = vmatpush.bf16.msrb.mxu0 %v5212_v42  ;;  %3219 = vmatpush.bf16.msrb.mxu1 %v5220_v43 }
 0x12b   :  { %v2094_v28 = vadd.f32 %v2078_v16, %v2062_v15  ;;  %v2095_v33 = vadd.f32 %v2079_v23, %v2063_v19  ;;  %v5229_v15 = vld [vmem:[%s5931_s3 + $0x1c0] sm:$0xff]  ;;  %v5268_v16 = vld [vmem:[%s5931_s3 + $0x2f8] sm:$0xff]  ;;  %v306_v19 = vperm.slane %v5587_v1, 4  ;;  %v5242_v23 = vld [vmem:[%s5931_s3 + $0x228] sm:$0xff] }
 0x12c   :  { %3232 = vmatpush.bf16.msrb.mxu2 %v5228_v46  ;;  %3245 = vmatpush.bf16.msrb.mxu3 %v5236_v48  ;;  %v2064_v46 = vmax.f32 %v1682_v32, 0.0  ;;  %v2065_v48 = vmax.f32 %v1695_v34, 0.0 }
 0x12d   :  { %v2110_v35 = vpack.c.bf16 %v2094_v28, %v2094_v28  ;;  %v2111_v39 = vpack.c.bf16 %v2095_v33, %v2095_v33  ;;  %v5267_v28 = vld [vmem:[%s5931_s3 + $0x2f0] sm:$0xff]  ;;  %v1708_v32 = vadd.f32 %v5438_v0, %v306_v19  ;;  %v5241_v33 = vld [vmem:[%s5931_s3 + $0x220] sm:$0xff]  ;;  %v5266_v0 = vld [vmem:[%s5931_s3 + $0x2e8] sm:$0xff] }
 0x12e   :  { %3207 = vmatpush.bf16.msrb.mxu0 %v5211_v47  ;;  %3220 = vmatpush.bf16.msrb.mxu1 %v5219_v49  ;;  %v1902_v41 = vpop.f32.mrf.mxu3  ;;  %v1865_v42 = vpop.f32.mrf.mxu0  ;;  %v5254_v19 = vld [vmem:[%s5931_s3 + $0x288] sm:$0xff] }
 0x12f   :  { %v1889_v36 = vpop.f32.mrf.mxu2  ;;  %v1903_v43 = vadd.f32 %v1902_v41, %v321_v29  ;;  %3162 = vmatmul.bf16.vlgmr.msra.gmra.mxu0 %v2110_v35  ;;  %v1878_v44 = vpop.f32.mrf.mxu1  ;;  %3175 = vmatmul.bf16.vlgmr.msra.gmra.mxu1 %v2111_v39  ;;  %v323_v29 = vperm.slane %v5592_v51, 5  ;;  %v309_v42 = vperm.slane %v5587_v1, 7 }
 0x130   :  { %3233 = vmatpush.bf16.msrb.mxu2 %v5227_v55  ;;  %3246 = vmatpush.bf16.msrb.mxu3 %v5235_v58  ;;  %v1890_v40 = vadd.f32 %v1889_v36, %v320_v24  ;;  %v5214_v58 = vld [vmem:[%s5931_s3 + $0x148] sm:$0xff]  ;;  %v307_v24 = vperm.slane %v5587_v1, 5  ;;  %v5249_v36 = vld [vmem:[%s5931_s3 + $0x260] sm:$0xff] }
 0x131   :  { %v2081_v49 = vmax.f32 %v1903_v43, 0.0  ;;  %v5240_v43 = vld [vmem:[%s5931_s3 + $0x218] sm:$0xff] }
 0x132   :  { %3208 = vmatpush.bf16.msrb.mxu0 %v5210_v57  ;;  %3221 = vmatpush.bf16.msrb.mxu1 %v5218_v61  ;;  %v2080_v47 = vmax.f32 %v1890_v40, 0.0  ;;  %v5231_v61 = vld [vmem:[%s5931_s3 + $0x1d0] sm:$0xff]  ;;  %v1721_v34 = vadd.f32 %v5440_v14, %v307_v24  ;;  %v308_v40 = vperm.slane %v5587_v1, 6  ;;  %v5257_v14 = vld [vmem:[%s5931_s3 + $0x2a0] sm:$0xff] }
 0x133   :  { %v2097_v57 = vadd.f32 %v2081_v49, %v2065_v48  ;;  %v325_v49 = vperm.slane %v5592_v51, 7  ;;  %v5265_v1 = vld [vmem:[%s5931_s3 + $0x2e0] sm:$0xff] }
 0x134   :  { %3234 = vmatpush.bf16.msrb.mxu2 %v5226_v3  ;;  %3247 = vmatpush.bf16.msrb.mxu3 %v5234_v62  ;;  %v2096_v55 = vadd.f32 %v2080_v47, %v2064_v46  ;;  %v5222_v3 = vld [vmem:[%s5931_s3 + $0x188] sm:$0xff]  ;;  %v5244_v62 = vld [vmem:[%s5931_s3 + $0x238] sm:$0xff]  ;;  %v2067_v44 = vmax.f32 %v1721_v34, 0.0  ;;  %v324_v46 = vperm.slane %v5592_v51, 6 }
 0x135   :  { %v2113_v63 = vpack.c.bf16 %v2097_v57, %v2097_v57  ;;  %v5248_v47 = vld [vmem:[%s5931_s3 + $0x258] sm:$0xff]  ;;  %v1747_v57 = vadd.f32 %v5444_v25, %v309_v42 }
 0x136   :  { %3209 = vmatpush.bf16.msrb.mxu0 %v5209_v6  ;;  %3222 = vmatpush.bf16.msrb.mxu1 %v5217_v10  ;;  %v2112_v60 = vpack.c.bf16 %v2096_v55, %v2096_v55  ;;  %v1904_v4 = vpop.f32.mrf.mxu3  ;;  %v5213_v6 = vld [vmem:[%s5931_s3 + $0x140] sm:$0xff]  ;;  %v5264_v25 = vld [vmem:[%s5931_s3 + $0x2d8] sm:$0xff] }
 0x137   :  { %v1891_v2 = vpop.f32.mrf.mxu2  ;;  %3201 = vmatmul.bf16.vlgmr.msra.gmra.mxu3 %v2113_v63  ;;  %v5221_v10 = vld [vmem:[%s5931_s3 + $0x180] sm:$0xff]  ;;  %v5292_v34 = vld [vmem:[%s5931_s3 + $0x3b8] sm:$0xff] }
 0x138   :  { %3235 = vmatpush.bf16.msrb.mxu2 %v5225_v18  ;;  %3248 = vmatpush.bf16.msrb.mxu3 %v5233_v27  ;;  %v5259_v18 = vld [vmem:[%s5931_s3 + $0x2b0] sm:$0xff]  ;;  %v322_v27 = vperm.slane %v5592_v51, 4 }
 0x139   :  { %3188 = vmatmul.bf16.vlgmr.msra.gmra.mxu2 %v2112_v60  ;;  %v5239_v51 = vld [vmem:[%s5931_s3 + $0x210] sm:$0xff] }
 0x13a   :  { %3210 = vmatpush.bf16.msrb.mxu0 %v5208_v26  ;;  %3223 = vmatpush.bf16.msrb.mxu1 %v5216_v30  ;;  %v5250_v26 = vld [vmem:[%s5931_s3 + $0x268] sm:$0xff] }
 0x13b   :  { %v5258_v30 = vld [vmem:[%s5931_s3 + $0x2a8] sm:$0xff] }
 0x13c   :  { %3236 = vmatpush.bf16.msrb.mxu2 %v5224_v38  ;;  %3249 = vmatpush.bf16.msrb.mxu3 %v5232_v54 }
 0x13e   :  { %3211 = vmatpush.bf16.msrb.mxu0 %v5207_v50  ;;  %3224 = vmatpush.bf16.msrb.mxu1 %v5215_v45  ;;  %v2066_v50 = vmax.f32 %v1708_v32, 0.0  ;;  %v5262_v32 = vld [vmem:[%s5931_s3 + $0x2c8] sm:$0xff] }
 0x140   :  { %3237 = vmatpush.bf16.msrb.mxu2 %v5223_v53  ;;  %3250 = vmatpush.bf16.msrb.mxu3 %v5231_v61  ;;  %v1734_v53 = vadd.f32 %v5442_v20, %v308_v40  ;;  %v5247_v20 = vld [vmem:[%s5931_s3 + $0x250] sm:$0xff]  ;;  %v5816_v40 = vld [vmem:[%s5930_s2 + $0x8] sm:$0xff] }
 0x141   :  { %v310_v42 = vperm.slane %v5816_v40, 0 }
 0x142   :  { %3212 = vmatpush.bf16.msrb.mxu0 %v5206_v56  ;;  %3225 = vmatpush.bf16.msrb.mxu1 %v5214_v58  ;;  %v5256_v56 = vld [vmem:[%s5931_s3 + $0x298] sm:$0xff] }
 0x144   :  { %3238 = vmatpush.bf16.msrb.mxu2 %v5222_v3  ;;  %3251 = vmatpush.bf16.msrb.mxu3 %v5230_v31  ;;  %v2069_v31 = vmax.f32 %v1747_v57, 0.0  ;;  %v5298_v57 = vld [vmem:[%s5931_s3 + $0x3e8] sm:$0xff] }
 0x146   :  { %3213 = vmatpush.bf16.msrb.mxu0 %v5205_v5  ;;  %3226 = vmatpush.bf16.msrb.mxu1 %v5213_v6  ;;  %v1915_v35 = vpop.f32.mrf.mxu0  ;;  %v1928_v39 = vpop.f32.mrf.mxu1  ;;  %v2068_v6 = vmax.f32 %v1734_v53, 0.0 }
 0x147   :  { %v1916_v38 = vadd.f32 %v1915_v35, %v322_v27  ;;  %v1929_v41 = vadd.f32 %v1928_v39, %v323_v29  ;;  %v5276_v29 = vld [vmem:[%s5931_s3 + $0x338] sm:$0xff]  ;;  %v5275_v35 = vld [vmem:[%s5931_s3 + $0x330] sm:$0xff] }
 0x148   :  { %3239 = vmatpush.bf16.msrb.mxu2 %v5221_v10  ;;  %3252 = vmatpush.bf16.msrb.mxu3 %v5229_v15  ;;  %v5300_v39 = vld [vmem:[%s5931_s3 + $0x3f8] sm:$0xff] }
 0x149   :  { %v2082_v54 = vmax.f32 %v1916_v38, 0.0  ;;  %v2083_v45 = vmax.f32 %v1929_v41, 0.0  ;;  %v5261_v38 = vld [vmem:[%s5931_s3 + $0x2c0] sm:$0xff]  ;;  %v5821_v41 = vld [vmem:[%s5930_s2 + $0x18] sm:$0xff] }
 0x14a   :  { %3258 = vmatpush.bf16.msra.mxu0 %v5244_v62  ;;  %3271 = vmatpush.bf16.msra.mxu1 %v5252_v8  ;;  %v5255_v8 = vld [vmem:[%s5931_s3 + $0x290] sm:$0xff] }
 0x14b   :  { %v2098_v48 = vadd.f32 %v2082_v54, %v2066_v50  ;;  %v2099_v55 = vadd.f32 %v2083_v45, %v2067_v44  ;;  %v5282_v50 = vld [vmem:[%s5931_s3 + $0x368] sm:$0xff]  ;;  %v311_v54 = vperm.slane %v5816_v40, 1  ;;  %v5299_v44 = vld [vmem:[%s5931_s3 + $0x3f0] sm:$0xff] }
 0x14c   :  { %3284 = vmatpush.bf16.msra.mxu2 %v5260_v37  ;;  %3297 = vmatpush.bf16.msra.mxu3 %v5268_v16  ;;  %v5238_v37 = vld [vmem:[%s5931_s3 + $0x208] sm:$0xff] }
 0x14d   :  { %v2114_v58 = vpack.c.bf16 %v2098_v48, %v2098_v48  ;;  %v2115_v61 = vpack.c.bf16 %v2099_v55, %v2099_v55  ;;  %v5290_v45 = vld [vmem:[%s5931_s3 + $0x3a8] sm:$0xff]  ;;  %v1760_v48 = vadd.f32 %v5450_v52, %v310_v42  ;;  %v5289_v52 = vld [vmem:[%s5931_s3 + $0x3a0] sm:$0xff] }
 0x14e   :  { %3259 = vmatpush.bf16.msra.mxu0 %v5243_v12  ;;  %3272 = vmatpush.bf16.msra.mxu1 %v5251_v13  ;;  %v1954_v2 = vpop.f32.mrf.mxu3  ;;  %v1917_v3 = vpop.f32.mrf.mxu0  ;;  %v5246_v13 = vld [vmem:[%s5931_s3 + $0x248] sm:$0xff]  ;;  %v5277_v42 = vld [vmem:[%s5931_s3 + $0x340] sm:$0xff] }
 0x14f   :  { %v1941_v60 = vpop.f32.mrf.mxu2  ;;  %v1955_v4 = vadd.f32 %v1954_v2, %v325_v49  ;;  %3214 = vmatmul.bf16.vlgmr.msrb.gmra.mxu0 %v2114_v58  ;;  %v1930_v5 = vpop.f32.mrf.mxu1  ;;  %3227 = vmatmul.bf16.vlgmr.msrb.gmra.mxu1 %v2115_v61  ;;  %v5281_v49 = vld [vmem:[%s5931_s3 + $0x360] sm:$0xff]  ;;  %v312_v58 = vperm.slane %v5816_v40, 2  ;;  %v2070_v61 = vmax.f32 %v1760_v48, 0.0  ;;  %v5280_v2 = vld [vmem:[%s5931_s3 + $0x358] sm:$0xff]  ;;  %v330_v48 = vperm.slane %v5821_v41, 4 }
 0x150   :  { %3285 = vmatpush.bf16.msra.mxu2 %v5259_v18  ;;  %3298 = vmatpush.bf16.msra.mxu3 %v5267_v28  ;;  %v1942_v63 = vadd.f32 %v1941_v60, %v324_v46  ;;  %v5263_v18 = vld [vmem:[%s5931_s3 + $0x2d0] sm:$0xff]  ;;  %v5245_v28 = vld [vmem:[%s5931_s3 + $0x240] sm:$0xff]  ;;  %v327_v46 = vperm.slane %v5821_v41, 1 }
 0x151   :  { %v2085_v10 = vmax.f32 %v1955_v4, 0.0  ;;  %v328_v4 = vperm.slane %v5821_v41, 2 }
 0x152   :  { %3260 = vmatpush.bf16.msra.mxu0 %v5242_v23  ;;  %3273 = vmatpush.bf16.msra.mxu1 %v5250_v26  ;;  %v2084_v62 = vmax.f32 %v1942_v63, 0.0  ;;  %v5237_v26 = vld [vmem:[%s5931_s3 + $0x200] sm:$0xff] }
 0x153   :  { %v2101_v15 = vadd.f32 %v2085_v10, %v2069_v31  ;;  %v5271_v31 = vld [vmem:[%s5931_s3 + $0x310] sm:$0xff] }
 0x154   :  { %3286 = vmatpush.bf16.msra.mxu2 %v5258_v30  ;;  %3299 = vmatpush.bf16.msra.mxu3 %v5266_v0  ;;  %v2100_v12 = vadd.f32 %v2084_v62, %v2068_v6  ;;  %v5284_v30 = vld [vmem:[%s5931_s3 + $0x378] sm:$0xff]  ;;  %v5291_v0 = vld [vmem:[%s5931_s3 + $0x3b0] sm:$0xff]  ;;  %v5297_v6 = vld [vmem:[%s5931_s3 + $0x3e0] sm:$0xff]  ;;  %v1786_v62 = vadd.f32 %v5454_v11, %v312_v58 }
 0x155   :  { %v2117_v23 = vpack.c.bf16 %v2101_v15, %v2101_v15  ;;  %v5288_v15 = vld [vmem:[%s5931_s3 + $0x398] sm:$0xff] }
 0x156   :  { %3261 = vmatpush.bf16.msra.mxu0 %v5241_v33  ;;  %3274 = vmatpush.bf16.msra.mxu1 %v5249_v36  ;;  %v2116_v16 = vpack.c.bf16 %v2100_v12, %v2100_v12  ;;  %v1956_v27 = vpop.f32.mrf.mxu3  ;;  %v5253_v33 = vld [vmem:[%s5931_s3 + $0x280] sm:$0xff]  ;;  %v5283_v36 = vld [vmem:[%s5931_s3 + $0x370] sm:$0xff] }
 0x157   :  { %v1943_v24 = vpop.f32.mrf.mxu2  ;;  %3253 = vmatmul.bf16.vlgmr.msrb.gmra.mxu3 %v2117_v23 }
 0x158   :  { %3287 = vmatpush.bf16.msra.mxu2 %v5257_v14  ;;  %3300 = vmatpush.bf16.msra.mxu3 %v5265_v1  ;;  %v5274_v14 = vld [vmem:[%s5931_s3 + $0x328] sm:$0xff]  ;;  %v1773_v1 = vadd.f32 %v5452_v59, %v311_v54  ;;  %v5272_v59 = vld [vmem:[%s5931_s3 + $0x318] sm:$0xff] }
 0x159   :  { %3240 = vmatmul.bf16.vlgmr.msrb.gmra.mxu2 %v2116_v16 }
 0x15a   :  { %3262 = vmatpush.bf16.msra.mxu0 %v5240_v43  ;;  %3275 = vmatpush.bf16.msra.mxu1 %v5248_v47  ;;  %v326_v43 = vperm.slane %v5821_v41, 0  ;;  %v5273_v47 = vld [vmem:[%s5931_s3 + $0x320] sm:$0xff]  ;;  %v2071_v3 = vmax.f32 %v1773_v1, 0.0 }
 0x15c   :  { %3288 = vmatpush.bf16.msra.mxu2 %v5256_v56  ;;  %3301 = vmatpush.bf16.msra.mxu3 %v5264_v25  ;;  %v329_v25 = vperm.slane %v5821_v41, 3 }
 0x15e   :  { %3263 = vmatpush.bf16.msra.mxu0 %v5239_v51  ;;  %3276 = vmatpush.bf16.msra.mxu1 %v5247_v20  ;;  %v313_v51 = vperm.slane %v5816_v40, 3 }
 0x160   :  { %3289 = vmatpush.bf16.msra.mxu2 %v5255_v8  ;;  %3302 = vmatpush.bf16.msra.mxu3 %v5263_v18  ;;  %v1799_v10 = vadd.f32 %v5456_v17, %v313_v51  ;;  %v5296_v17 = vld [vmem:[%s5931_s3 + $0x3d8] sm:$0xff] }
 0x162   :  { %3264 = vmatpush.bf16.msra.mxu0 %v5238_v37  ;;  %3277 = vmatpush.bf16.msra.mxu1 %v5246_v13  ;;  %v5279_v13 = vld [vmem:[%s5931_s3 + $0x350] sm:$0xff] }
 0x164   :  { %3290 = vmatpush.bf16.msra.mxu2 %v5254_v19  ;;  %3303 = vmatpush.bf16.msra.mxu3 %v5262_v32  ;;  %v5278_v32 = vld [vmem:[%s5931_s3 + $0x348] sm:$0xff] }
 0x166   :  { %3265 = vmatpush.bf16.msra.mxu0 %v5237_v26  ;;  %3278 = vmatpush.bf16.msra.mxu1 %v5245_v28  ;;  %v1967_v53 = vpop.f32.mrf.mxu0  ;;  %v1980_v56 = vpop.f32.mrf.mxu1  ;;  %v2072_v26 = vmax.f32 %v1786_v62, 0.0  ;;  %v5270_v28 = vld [vmem:[%s5931_s3 + $0x308] sm:$0xff] }
 0x167   :  { %v1968_v55 = vadd.f32 %v1967_v53, %v326_v43  ;;  %v1981_v60 = vadd.f32 %v1980_v56, %v327_v46  ;;  %v5294_v43 = vld [vmem:[%s5931_s3 + $0x3c8] sm:$0xff]  ;;  %v314_v46 = vperm.slane %v5816_v40, 4 }
 0x168   :  { %3291 = vmatpush.bf16.msra.mxu2 %v5253_v33  ;;  %3304 = vmatpush.bf16.msra.mxu3 %v5261_v38  ;;  %v5287_v33 = vld [vmem:[%s5931_s3 + $0x390] sm:$0xff] }
 0x169   :  { %v2086_v63 = vmax.f32 %v1968_v55, 0.0  ;;  %v2087_v20 = vmax.f32 %v1981_v60, 0.0  ;;  %v5295_v38 = vld [vmem:[%s5931_s3 + $0x3d0] sm:$0xff]  ;;  %v1812_v1 = vadd.f32 %v5492_v7, %v314_v46 }
 0x16a   :  { %3310 = vmatpush.bf16.msrb.mxu0 %v5276_v29  ;;  %3323 = vmatpush.bf16.msrb.mxu1 %v5284_v30  ;;  %v2073_v29 = vmax.f32 %v1799_v10, 0.0 }
 0x16b   :  { %v2102_v5 = vadd.f32 %v2086_v63, %v2070_v61  ;;  %v2103_v8 = vadd.f32 %v2087_v20, %v2071_v3  ;;  %v2074_v60 = vmax.f32 %v1812_v1, 0.0  ;;  %v333_v20 = vperm.slane %v5821_v41, 7 }
 0x16c   :  { %3336 = vmatpush.bf16.msrb.mxu2 %v5292_v34  ;;  %3349 = vmatpush.bf16.msrb.mxu3 %v5300_v39  ;;  %v5269_v39 = vld [vmem:[%s5931_s3 + $0x300] sm:$0xff] }
 0x16d   :  { %v2118_v37 = vpack.c.bf16 %v2102_v5, %v2102_v5  ;;  %v2119_v11 = vpack.c.bf16 %v2103_v8, %v2103_v8 }
 0x16e   :  { %3311 = vmatpush.bf16.msrb.mxu0 %v5275_v35  ;;  %3324 = vmatpush.bf16.msrb.mxu1 %v5283_v36  ;;  %v2006_v18 = vpop.f32.mrf.mxu3  ;;  %v1969_v19 = vpop.f32.mrf.mxu0 }
 0x16f   :  { %v1993_v12 = vpop.f32.mrf.mxu2  ;;  %v2007_v23 = vadd.f32 %v2006_v18, %v329_v25  ;;  %3266 = vmatmul.bf16.vlgmr.msra.gmra.mxu0 %v2118_v37  ;;  %v1982_v24 = vpop.f32.mrf.mxu1  ;;  %3279 = vmatmul.bf16.vlgmr.msra.gmra.mxu1 %v2119_v11  ;;  %v5305_v19 = vld [vmem:[%s5932_s4] ss:$0 sm:$0xff]  ;;  %s5362_s4 = smov [#allocation5]  }
 0x170   :  { %3337 = vmatpush.bf16.msrb.mxu2 %v5291_v0  ;;  %3350 = vmatpush.bf16.msrb.mxu3 %v5299_v44  ;;  %v1994_v16 = vadd.f32 %v1993_v12, %v328_v4  ;;  %v5285_v44 = vld [vmem:[%s5931_s3 + $0x380] sm:$0xff]  ;;  %s3369_s22 = sshll.u32 %s5362_s4, 4  ;;  %s3370_s22 = int_to_ptr.vmem [resolvable:$true] %s3369_s22 }
 0x171   :  { %v2089_v30 = vmax.f32 %v2007_v23, 0.0 }
 0x172   :  { %3312 = vmatpush.bf16.msrb.mxu0 %v5274_v14  ;;  %3325 = vmatpush.bf16.msrb.mxu1 %v5282_v50  ;;  %v2088_v27 = vmax.f32 %v1994_v16, 0.0  ;;  %v5286_v50 = vld [vmem:[%s5931_s3 + $0x388] sm:$0xff] }
 0x173   :  { %v2105_v35 = vadd.f32 %v2089_v30, %v2073_v29 }
 0x174   :  { %3338 = vmatpush.bf16.msrb.mxu2 %v5290_v45  ;;  %3351 = vmatpush.bf16.msrb.mxu3 %v5298_v57  ;;  %v2104_v34 = vadd.f32 %v2088_v27, %v2072_v26  ;;  %v5293_v45 = vld [vmem:[%s5931_s3 + $0x3c0] sm:$0xff] }
 0x175   :  { %v2121_v0 = vpack.c.bf16 %v2105_v35, %v2105_v35 }
 0x176   :  { %3313 = vmatpush.bf16.msrb.mxu0 %v5273_v47  ;;  %3326 = vmatpush.bf16.msrb.mxu1 %v5281_v49  ;;  %v2120_v36 = vpack.c.bf16 %v2104_v34, %v2104_v34  ;;  %v2008_v54 = vpop.f32.mrf.mxu3  ;;  %v315_v47 = vperm.slane %v5816_v40, 5  ;;  %v331_v49 = vperm.slane %v5821_v41, 5 }
 0x177   :  { %v1995_v14 = vpop.f32.mrf.mxu2  ;;  %3305 = vmatmul.bf16.vlgmr.msra.gmra.mxu3 %v2121_v0 }
 0x178   :  { %3339 = vmatpush.bf16.msrb.mxu2 %v5289_v52  ;;  %3352 = vmatpush.bf16.msrb.mxu3 %v5297_v6  ;;  %v1825_v53 = vadd.f32 %v5497_v9, %v315_v47  ;;  %v316_v52 = vperm.slane %v5816_v40, 6 }
 0x179   :  { %3292 = vmatmul.bf16.vlgmr.msra.gmra.mxu2 %v2120_v36 }
 0x17a   :  { %3314 = vmatpush.bf16.msrb.mxu0 %v5272_v59  ;;  %3327 = vmatpush.bf16.msrb.mxu1 %v5280_v2  ;;  %v317_v59 = vperm.slane %v5816_v40, 7  ;;  %v2075_v61 = vmax.f32 %v1825_v53, 0.0  ;;  %v332_v2 = vperm.slane %v5821_v41, 6  ;;  %v1838_v7 = vadd.f32 %v5520_v21, %v316_v52 }
 0x17c   :  { %3340 = vmatpush.bf16.msrb.mxu2 %v5288_v15  ;;  %3353 = vmatpush.bf16.msrb.mxu3 %v5296_v17  ;;  %v1851_v4 = vadd.f32 %v5522_v22, %v317_v59  ;;  %v2076_v37 = vmax.f32 %v1838_v7, 0.0 }
 0x17e   :  { %3315 = vmatpush.bf16.msrb.mxu0 %v5271_v31  ;;  %3328 = vmatpush.bf16.msrb.mxu1 %v5279_v13  ;;  %v2077_v13 = vmax.f32 %v1851_v4, 0.0 }
 0x180   :  { %3341 = vmatpush.bf16.msrb.mxu2 %v5287_v33  ;;  %3354 = vmatpush.bf16.msrb.mxu3 %v5295_v38 }
 0x182   :  { %3316 = vmatpush.bf16.msrb.mxu0 %v5270_v28  ;;  %3329 = vmatpush.bf16.msrb.mxu1 %v5278_v32 }
 0x184   :  { %3342 = vmatpush.bf16.msrb.mxu2 %v5286_v50  ;;  %3355 = vmatpush.bf16.msrb.mxu3 %v5294_v43 }
 0x186   :  { %3317 = vmatpush.bf16.msrb.mxu0 %v5269_v39  ;;  %3330 = vmatpush.bf16.msrb.mxu1 %v5277_v42  ;;  %v2019_v55 = vpop.f32.mrf.mxu0  ;;  %v2032_v57 = vpop.f32.mrf.mxu1 }
 0x187   :  { %v2020_v56 = vadd.f32 %v2019_v55, %v330_v48  ;;  %v2033_v58 = vadd.f32 %v2032_v57, %v331_v49 }
 0x188   :  { %3343 = vmatpush.bf16.msrb.mxu2 %v5285_v44  ;;  %3356 = vmatpush.bf16.msrb.mxu3 %v5293_v45 }
 0x189   :  { %v2090_v51 = vmax.f32 %v2020_v56, 0.0  ;;  %v2091_v63 = vmax.f32 %v2033_v58, 0.0 }
 0x18b   :  { %v2106_v3 = vadd.f32 %v2090_v51, %v2074_v60  ;;  %v2107_v9 = vadd.f32 %v2091_v63, %v2075_v61 }
 0x18d   :  { %v2122_v5 = vpack.c.bf16 %v2106_v3, %v2106_v3  ;;  %v2123_v6 = vpack.c.bf16 %v2107_v9, %v2107_v9 }
 0x18e   :  { %v2045_v25 = vpop.f32.mrf.mxu2  ;;  %v2058_v8 = vpop.f32.mrf.mxu3 }
 0x18f   :  { %v2046_v62 = vadd.f32 %v2045_v25, %v332_v2  ;;  %v2021_v31 = vpop.f32.mrf.mxu0  ;;  %v2059_v40 = vadd.f32 %v2058_v8, %v333_v20  ;;  %3318 = vmatmul.bf16.vlgmr.msrb.gmra.mxu0 %v2122_v5  ;;  %v2034_v10 = vpop.f32.mrf.mxu1  ;;  %3331 = vmatmul.bf16.vlgmr.msrb.gmra.mxu1 %v2123_v6 }
 0x191   :  { %v2092_v12 = vmax.f32 %v2046_v62, 0.0  ;;  %v2093_v15 = vmax.f32 %v2059_v40, 0.0 }
 0x193   :  { %v2108_v41 = vadd.f32 %v2092_v12, %v2076_v37  ;;  %v2109_v11 = vadd.f32 %v2093_v15, %v2077_v13 }
 0x195   :  { %v2124_v21 = vpack.c.bf16 %v2108_v41, %v2108_v41  ;;  %v2125_v16 = vpack.c.bf16 %v2109_v11, %v2109_v11 }
 0x196   :  { %v2047_v18 = vpop.f32.mrf.mxu2  ;;  %v2060_v22 = vpop.f32.mrf.mxu3 }
 0x197   :  { %3344 = vmatmul.bf16.vlgmr.msrb.gmra.mxu2 %v2124_v21  ;;  %3357 = vmatmul.bf16.vlgmr.msrb.gmra.mxu3 %v2125_v16 }
 0x1ac   :  { %v3163_v23 = vpop.f32.mrf.mxu0  ;;  %v3176_v17 = vpop.f32.mrf.mxu1 }
 0x1ad   :  { %v3164_v24 = vadd.f32 %v5305_v19, %v3163_v23 }
 0x1af   :  { %v3177_v26 = vadd.f32 %v3176_v17, %v3164_v24 }
 0x1b4   :  { %v3165_v27 = vpop.f32.mrf.mxu0  ;;  %v3178_v28 = vpop.f32.mrf.mxu1 }
 0x1ba   :  { %v3202_v32 = vpop.f32.mrf.mxu3 }
 0x1bc   :  { %v3189_v29 = vpop.f32.mrf.mxu2 }
 0x1bd   :  { %v3190_v30 = vadd.f32 %v3189_v29, %v3177_v26 }
 0x1bf   :  { %v3203_v33 = vadd.f32 %v3202_v32, %v3190_v30 }
 0x1c2   :  { %v3204_v35 = vpop.f32.mrf.mxu3 }
 0x1c4   :  { %v3191_v34 = vpop.f32.mrf.mxu2 }
 0x1cc   :  { %v3215_v36 = vpop.f32.mrf.mxu0  ;;  %v3228_v38 = vpop.f32.mrf.mxu1 }
 0x1cd   :  { %v3216_v47 = vadd.f32 %v3215_v36, %v3203_v33 }
 0x1cf   :  { %v3229_v1 = vadd.f32 %v3228_v38, %v3216_v47 }
 0x1d4   :  { %v3217_v39 = vpop.f32.mrf.mxu0  ;;  %v3230_v0 = vpop.f32.mrf.mxu1 }
 0x1da   :  { %v3254_v42 = vpop.f32.mrf.mxu3 }
 0x1dc   :  { %v3241_v14 = vpop.f32.mrf.mxu2 }
 0x1dd   :  { %v3242_v53 = vadd.f32 %v3241_v14, %v3229_v1 }
 0x1df   :  { %v3255_v57 = vadd.f32 %v3254_v42, %v3242_v53 }
 0x1e2   :  { %v3256_v54 = vpop.f32.mrf.mxu3 }
 0x1e4   :  { %v3243_v50 = vpop.f32.mrf.mxu2 }
 0x1ec   :  { %v3267_v43 = vpop.f32.mrf.mxu0  ;;  %v3280_v44 = vpop.f32.mrf.mxu1 }
 0x1ed   :  { %v3268_v52 = vadd.f32 %v3267_v43, %v3255_v57 }
 0x1ef   :  { %v3281_v58 = vadd.f32 %v3280_v44, %v3268_v52 }
 0x1f4   :  { %v3269_v45 = vpop.f32.mrf.mxu0  ;;  %v3282_v46 = vpop.f32.mrf.mxu1 }
 0x1fa   :  { %v3306_v49 = vpop.f32.mrf.mxu3 }
 0x1fc   :  { %v3293_v48 = vpop.f32.mrf.mxu2 }
 0x1fd   :  { %v3294_v51 = vadd.f32 %v3293_v48, %v3281_v58 }
 0x1ff   :  { %v3307_v61 = vadd.f32 %v3306_v49, %v3294_v51 }
 0x202   :  { %v3308_v56 = vpop.f32.mrf.mxu3 }
 0x204   :  { %v3295_v55 = vpop.f32.mrf.mxu2 }
 0x20c   :  { %v3319_v60 = vpop.f32.mrf.mxu0  ;;  %v3332_v59 = vpop.f32.mrf.mxu1 }
 0x20d   :  { %v3320_v63 = vadd.f32 %v3319_v60, %v3307_v61 }
 0x20f   :  { %v3333_v20 = vadd.f32 %v3332_v59, %v3320_v63 }
 0x214   :  { %v3321_v2 = vpop.f32.mrf.mxu0  ;;  %v3334_v3 = vpop.f32.mrf.mxu1 }
 0x21a   :  { %v3345_v7 = vpop.f32.mrf.mxu2  ;;  %v3358_v4 = vpop.f32.mrf.mxu3 }
 0x21b   :  { %v3346_v9 = vadd.f32 %v3345_v7, %v3333_v20 }
 0x21d   :  { %v3359_v5 = vadd.f32 %v3358_v4, %v3346_v9 }
 0x21f   :  { %3363 = vst.msk [vmem:[#allocation5] sm:$0xff] %vm3362_vm0, %v3359_v5 }
 0x220   :  { %3374 = dma.vmem_to_hbm [thread:$0]  %s3370_s22, 128, %s3372_s1, [#allocation4]  }
 0x222   :  { %v3347_v25 = vpop.f32.mrf.mxu2  ;;  %v3360_v6 = vpop.f32.mrf.mxu3 }
 0x223   :  { %5357 = dma.done.wait [#allocation4], 128  }
 0x224   :  { %5358 = vsyncadd [#allocation4], 4294967168 }
 0x225   :  { %3379 = vsyncpa [#allocation3], 1 }
 0x226   :  { %3380 = vsyncpa [#allocation4], 1 }

</bundles_post_ra>
